<compile_context>
chip_gen: v7x
topology: tpu7x:2x2x1
jax: 0.10.0
libtpu: 0.0.40
codegen_flags: <defaults>
</compile_context>

<pallas_src>
import functools

import numpy as np
import jax
import jax.numpy as jnp
from jax.experimental import pallas as pl
from jax.experimental.pallas import tpu as pltpu

EPS = 1e-5
SLOPE = 0.2          # LeakyReLU negative_slope
CIN, CIN_PAD = 6, 8  # real / padded input channels
C1, C2, C3 = 64, 128, 1024


def _lrelu(v):
  return jnp.where(v > 0, v, SLOPE * v)


def _transform_net_kernel(
    x_ref,                                  # (8, TILE_ROWS) channels-first input tile
    w1_ref, w2_ref, w3_ref,                 # (8,64) (64,128) (128,1024), compute dtype
    nmax_ref,                               # out (B, 1024): per-batch N-max of conv3 pre-acts
    sum3_ref, sq3_ref,                      # out (1, 1024): conv3 pre-act stats
    ssum_ref, gram_ref,                     # (8,1), (8,8): input column sums / Gram matrix
    sum2_ref, sq2_ref,                      # (1, 128): conv2 pre-act stats
    z2max_ref,                              # (n_tiles, BN_TILE, 128): K-maxed conv2 pre-acts
    bmax_ref,                               # (1, 1024): running per-batch max accumulator
    *, B, N, K, BN_TILE, NT, compute_dtype):
  p = pl.program_id(0)        # streaming phase (0, 1, 2)
  b = pl.program_id(1)        # batch element
  q = pl.program_id(2)        # point-tile within the batch element
  t = b * NT + q              # flat tile id
  n_rows = float(B * N * K)   # BN1 / BN2 population (elements per channel)

  # ---- init: first grid step only -----------------------------------------
  @pl.when((p == 0) & (b == 0) & (q == 0))
  def _init():
    ssum_ref[...] = jnp.zeros_like(ssum_ref)
    gram_ref[...] = jnp.zeros_like(gram_ref)
    sum2_ref[...] = jnp.zeros_like(sum2_ref)
    sq2_ref[...] = jnp.zeros_like(sq2_ref)

  # ---- phase 0: input moments only (no (TR,64) matmul needed) --------------
  # sum_r z1[r,c]   = s . w_c        with s = row-sums of x
  # sum_r z1[r,c]^2 = w_c^T G w_c    with G = x x^T  (8x8 Gram matrix)
  @pl.when(p == 0)
  def _phase0():
    xb = x_ref[...]                                            # (8, TR)
    ssum_ref[...] += jnp.sum(xb.astype(jnp.float32), axis=1, keepdims=True)
    gram_ref[...] += jax.lax.dot_general(
        xb, xb, dimension_numbers=(((1,), (1,)), ((), ())),
        preferred_element_type=jnp.float32)                    # (8, 8)

  def bn1_stats():
    w1f = w1_ref[...].astype(jnp.float32)                      # tiny (8,64) cast
    s1 = jax.lax.dot_general(ssum_ref[...], w1f,
                             dimension_numbers=(((0,), (0,)), ((), ())),
                             preferred_element_type=jnp.float32)   # (1, 64)
    gw = jnp.dot(gram_ref[...], w1f, preferred_element_type=jnp.float32)
    q1 = jnp.sum(gw * w1f, axis=0, keepdims=True)                   # (1, 64)
    mean = s1 / n_rows
    var = q1 / n_rows - mean * mean
    return mean, jax.lax.rsqrt(var + EPS)

  def bn_stats(sum_v, sq_v, count):
    inv_n = 1.0 / count
    mean = sum_v * inv_n
    var = sq_v * inv_n - mean * mean
    return mean, jax.lax.rsqrt(var + EPS)

  # ---- phase 1: BN1+LReLU -> conv2; conv2 stats; K-max cache ---------------
  @pl.when(p == 1)
  def _phase1():
    z1 = jax.lax.dot_general(
        x_ref[...], w1_ref[...],
        dimension_numbers=(((0,), (0,)), ((), ())),
        preferred_element_type=jnp.float32)                    # (TR, 64)
    m1, i1 = bn1_stats()
    h1 = _lrelu((z1 - m1) * i1)                                # (TR, 64) f32
    z2 = jnp.dot(h1.astype(compute_dtype), w2_ref[...],
                 preferred_element_type=jnp.float32)           # (TR, 128)
    sum2_ref[...] += jnp.sum(z2, axis=0, keepdims=True)
    sq2_ref[...] += jnp.sum(z2 * z2, axis=0, keepdims=True)
    # K-max of the *raw* conv2 pre-activations (BN2+LReLU are monotone per
    # channel, so they commute with the max and are applied in phase 2).
    # Rows are (point-major, neighbor-fastest); K % 8 == 0 keeps the reshape
    # sublane-tile aligned.
    z2max_ref[t] = jnp.max(z2.reshape(BN_TILE, K, C2), axis=1).astype(compute_dtype)

  # ---- phase 2: BN2+LReLU -> conv3; conv3 stats; running per-batch N-max ---
  @pl.when(p == 2)
  def _phase2():
    @pl.when((b == 0) & (q == 0))
    def _():
      sum3_ref[...] = jnp.zeros_like(sum3_ref)
      sq3_ref[...] = jnp.zeros_like(sq3_ref)

    @pl.when(q == 0)
    def _():
      bmax_ref[...] = jnp.full_like(bmax_ref, -jnp.inf)

    m2, i2 = bn_stats(sum2_ref[...], sq2_ref[...], n_rows)
    h2 = _lrelu((z2max_ref[t].astype(jnp.float32) - m2) * i2)  # (BN_TILE, 128)
    z3 = jnp.dot(h2.astype(compute_dtype), w3_ref[...],
                 preferred_element_type=jnp.float32)           # (BN_TILE, 1024)
    sum3_ref[...] += jnp.sum(z3, axis=0, keepdims=True)
    sq3_ref[...] += jnp.sum(z3 * z3, axis=0, keepdims=True)
    bmax_ref[...] = jnp.maximum(bmax_ref[...], jnp.max(z3, axis=0, keepdims=True))

    # Commit this batch element's N-max once per batch (masked row-select write
    # keeps the store sublane-aligned; cost is O(B) per batch element, not per tile).
    @pl.when(q == NT - 1)
    def _():
      row_is_b = jax.lax.broadcasted_iota(jnp.int32, (B, C3), 0) == b
      nmax_ref[...] = jnp.where(row_is_b, bmax_ref[...], nmax_ref[...])


def _pick_bn_tile(N, K, target_rows=2048):
  """Largest divisor t of N with t*K lane-aligned (%128==0) and t*K <= target_rows."""
  best = None
  for t in range(1, N + 1):
    if N % t or (t * K) % 128:
      continue
    if t * K <= target_rows:
      best = t
  if best is None:  # fall back to the smallest lane-aligned divisor (may exceed target)
    for t in range(1, N + 1):
      if N % t == 0 and (t * K) % 128 == 0:
        best = t
        break
  if best is None:
    # TODO(synk): pad the point/neighbor dims instead of asserting for odd N*K.
    raise ValueError("need a divisor t of N with t*K % 128 == 0")
  return best


def _vmem_limit_bytes():
  try:
    cap = int(pltpu.get_tpu_info().vmem_capacity_bytes)
  except Exception:
    cap = 64 * 1024 * 1024          # conservative (v7x physical per-TC VMEM)
  return max(32 * 1024 * 1024, min(cap * 3 // 4, 100 * 1024 * 1024))


@functools.partial(jax.jit, static_argnames=("bn_tile", "compute_dtype"))
def transform_net(x_nchw, params, *, bn_tile=None, compute_dtype=jnp.float32):
  """Fused Transform_Net forward.  Pass compute_dtype=jnp.bfloat16 for MXU throughput."""
  B, C, N, K = x_nchw.shape
  assert C == CIN
  w1, w2, w3, wl1, wl2, wt, bt = params

  if bn_tile is None:
    bn_tile = _pick_bn_tile(N, K)
  assert N % bn_tile == 0, "bn_tile must divide N (tiles must not cross batches)"
  tile_rows = bn_tile * K
  assert tile_rows % 128 == 0, "bn_tile*K must be a multiple of 128 (lane aligned)"
  nt = N // bn_tile
  n_tiles = B * nt
  rows = B * N * K

  # Channels-first, row-flattened input: (8, B*N*K), rows ordered (b, n, k) with k
  # fastest.  6 real channels are zero-padded to 8 so the conv1 contraction is fully
  # sublane-aligned.  Input and weights are pre-cast to the compute dtype here (bf16
  # halves input DMA bytes and weight VMEM; matmuls accumulate in f32 regardless).
  x_t = jnp.transpose(x_nchw, (1, 0, 2, 3)).reshape(CIN, rows)
  x_t = jnp.pad(x_t, ((0, CIN_PAD - CIN), (0, 0))).astype(compute_dtype)
  w1p = jnp.pad(w1, ((0, CIN_PAD - CIN), (0, 0))).astype(compute_dtype)
  w2c = w2.astype(compute_dtype)
  w3c = w3.astype(compute_dtype)

  kernel = functools.partial(
      _transform_net_kernel, B=B, N=N, K=K, BN_TILE=bn_tile, NT=nt,
      compute_dtype=compute_dtype)

  def const_spec(shape):                       # VMEM-resident constants (no per-step DMA)
    zero = (0,) * len(shape)
    return pl.BlockSpec(shape, lambda p, b, q, _z=zero: _z)

  def x_index_map(p, b, q):
    # Phase 2 never reads x: clamp its block index to a constant so the pipeline
    # skips the input DMA for the whole third pass (~1/3 of input HBM traffic).
    return (0, jnp.where(p < 2, b * nt + q, 0))

  grid = (3, B, nt)   # (phase, batch, point-tile); phases run in order.
  nmax, sum3, sq3 = pl.pallas_call(
      kernel,
      out_shape=(
          jax.ShapeDtypeStruct((B, C3), jnp.float32),
          jax.ShapeDtypeStruct((1, C3), jnp.float32),
          jax.ShapeDtypeStruct((1, C3), jnp.float32),
      ),
      grid=grid,
      in_specs=[
          pl.BlockSpec((CIN_PAD, tile_rows), x_index_map),
          const_spec(w1p.shape), const_spec(w2c.shape), const_spec(w3c.shape),
      ],
      out_specs=(
          pl.BlockSpec((B, C3), lambda p, b, q: (0, 0)),
          pl.BlockSpec((1, C3), lambda p, b, q: (0, 0)),
          pl.BlockSpec((1, C3), lambda p, b, q: (0, 0)),
      ),
      scratch_shapes=[
          pltpu.VMEM((CIN_PAD, 1), jnp.float32),        # input column sums
          pltpu.VMEM((CIN_PAD, CIN_PAD), jnp.float32),  # input Gram matrix
          pltpu.VMEM((1, C2), jnp.float32),             # conv2 sum
          pltpu.VMEM((1, C2), jnp.float32),             # conv2 sumsq
          pltpu.VMEM((n_tiles, bn_tile, C2), compute_dtype),  # K-maxed conv2 cache
          pltpu.VMEM((1, C3), jnp.float32),             # per-batch running N-max
      ],
      compiler_params=pltpu.CompilerParams(
          dimension_semantics=("arbitrary", "arbitrary", "arbitrary"),
          vmem_limit_bytes=_vmem_limit_bytes()),
  )(x_t, w1p, w2c, w3c)

  # ---- tiny (B,1024)->(B,9) tail in plain JAX (keeps wl1/wl2/wt out of kernel VMEM) ----
  n_pts = float(B * N)
  mean3 = sum3 / n_pts
  var3 = sq3 / n_pts - mean3 * mean3
  h3 = _lrelu((nmax - mean3) * jax.lax.rsqrt(var3 + EPS))      # (B, 1024)

  def bn_lrelu_rows(y):        # training-mode BN over the B batch rows
    mean = jnp.mean(y, axis=0, keepdims=True)
    c = y - mean
    var = jnp.mean(c * c, axis=0, keepdims=True)
    return _lrelu(c * jax.lax.rsqrt(var + EPS))

  h4 = bn_lrelu_rows(jnp.dot(h3, wl1, preferred_element_type=jnp.float32))   # (B, 512)
  h5 = bn_lrelu_rows(jnp.dot(h4, wl2, preferred_element_type=jnp.float32))   # (B, 256)
  out = jnp.dot(h5, wt, preferred_element_type=jnp.float32) + bt             # (B, 9)
  return out.reshape(B, 3, 3)


def transform_net_ref(x_nchw, params):
  """Pure-JAX reference mirroring the PyTorch forward (training-mode BN)."""
  B, C, N, K = x_nchw.shape
  w1, w2, w3, wl1, wl2, wt, bt = params
  x = jnp.transpose(x_nchw, (0, 2, 3, 1)).reshape(B * N * K, C)

  def bn_lrelu(y):
    m = y.mean(0, keepdims=True)
    v = ((y - m) ** 2).mean(0, keepdims=True)
    yh = (y - m) / jnp.sqrt(v + EPS)
    return jnp.where(yh > 0, yh, SLOPE * yh)

  h = bn_lrelu(x @ w1)
  h = bn_lrelu(h @ w2)
  h = h.reshape(B * N, K, C2).max(axis=1)
  h = bn_lrelu(h @ w3)
  h = h.reshape(B, N, C3).max(axis=1)
  h = bn_lrelu(h @ wl1)
  h = bn_lrelu(h @ wl2)
  return (h @ wt + bt).reshape(B, 3, 3)


def make_params(key, *, faithful_head=True):
  ks = jax.random.split(key, 7)
  w1 = 0.10 * jax.random.normal(ks[0], (CIN, C1), jnp.float32)   # Conv2d(6,64,1)    no bias
  w2 = 0.10 * jax.random.normal(ks[1], (C1, C2), jnp.float32)    # Conv2d(64,128,1)  no bias
  w3 = 0.05 * jax.random.normal(ks[2], (C2, C3), jnp.float32)    # Conv1d(128,1024,1) no bias
  wl1 = 0.05 * jax.random.normal(ks[3], (C3, 512), jnp.float32)  # Linear(1024,512)  no bias
  wl2 = 0.05 * jax.random.normal(ks[4], (512, 256), jnp.float32) # Linear(512,256)   no bias
  if faithful_head:
    wt = jnp.zeros((256, 9), jnp.float32)                        # transform.weight = 0
    bt = jnp.eye(3, dtype=jnp.float32).reshape(1, 9)             # transform.bias   = eye(3)
  else:  # randomized head: numerically exercises the whole fused pipeline
    wt = 0.05 * jax.random.normal(ks[5], (256, 9), jnp.float32)
    bt = 0.10 * jax.random.normal(ks[6], (1, 9), jnp.float32)
  return (w1, w2, w3, wl1, wl2, wt, bt)


if __name__ == "__main__":
  B, N, K = 2, 32, 8
  key = jax.random.PRNGKey(0)
  k_params, k_x = jax.random.split(key)
  x = jax.random.normal(k_x, (B, CIN, N, K), jnp.float32)

  # 1) Faithful Transform_Net head init (transform.weight = 0, bias = eye(3)).
  params = make_params(k_params, faithful_head=True)
  out = jax.block_until_ready(transform_net(x, params))
  ref = transform_net_ref(x, params)
  assert out.shape == (B, 3, 3)
  np.testing.assert_allclose(np.asarray(out), np.asarray(ref), atol=1e-4, rtol=1e-4)

  # 2) Randomized head to numerically validate the full streaming-BN pipeline.
  params_rnd = make_params(k_params, faithful_head=False)
  out_rnd = jax.block_until_ready(transform_net(x, params_rnd))
  ref_rnd = transform_net_ref(x, params_rnd)
  np.testing.assert_allclose(np.asarray(out_rnd), np.asarray(ref_rnd),
                             atol=1e-3, rtol=1e-3)

  # 3) bf16 path: pre-cast input/weights + bf16 z2max cache, f32 accumulation
  #    (recommended compute dtype on v5e/v6e/v7x for MXU throughput).
  out_bf16 = jax.block_until_ready(
      transform_net(x, params_rnd, compute_dtype=jnp.bfloat16))
  assert bool(jnp.isfinite(out_bf16).all())

  print("KERNEL_OK")
</pallas_src>

<mosaic_0001>
module attributes {stable_mosaic.version = 11 : i64} {
  func.func @_transform_net_kernel(%arg0: i32, %arg1: i32, %arg2: i32, %arg3: memref<8x256xf32, #tpu.memory_space<vmem>>, %arg4: memref<8x64xf32, #tpu.memory_space<vmem>>, %arg5: memref<64x128xf32, #tpu.memory_space<vmem>>, %arg6: memref<128x1024xf32, #tpu.memory_space<vmem>>, %arg7: memref<2x1024xf32, #tpu.memory_space<vmem>>, %arg8: memref<1x1024xf32, #tpu.memory_space<vmem>>, %arg9: memref<1x1024xf32, #tpu.memory_space<vmem>>, %arg10: memref<8x1xf32, #tpu.memory_space<vmem>>, %arg11: memref<8x8xf32, #tpu.memory_space<vmem>>, %arg12: memref<1x128xf32, #tpu.memory_space<vmem>>, %arg13: memref<1x128xf32, #tpu.memory_space<vmem>>, %arg14: memref<2x32x128xf32, #tpu.memory_space<vmem>>, %arg15: memref<1x1024xf32, #tpu.memory_space<vmem>>) attributes {dimension_semantics = [#tpu.dimension_semantics<arbitrary>, #tpu.dimension_semantics<arbitrary>, #tpu.dimension_semantics<arbitrary>], iteration_bounds = array<i64: 3, 2, 1>, scalar_prefetch = 0 : i64, scratch_operands = 6 : i64, tpu.core_type = #tpu.core_type<tc>, window_params = [{transform_indices = @transform_0, window_bounds = array<i64: 8, 256>}, {pipeline_mode = #tpu.pipeline_mode<synchronous>, transform_indices = @transform_1, window_bounds = array<i64: 8, 64>}, {pipeline_mode = #tpu.pipeline_mode<synchronous>, transform_indices = @transform_2, window_bounds = array<i64: 64, 128>}, {pipeline_mode = #tpu.pipeline_mode<synchronous>, transform_indices = @transform_3, window_bounds = array<i64: 128, 1024>}, {pipeline_mode = #tpu.pipeline_mode<synchronous>, transform_indices = @transform_4, window_bounds = array<i64: 2, 1024>}, {pipeline_mode = #tpu.pipeline_mode<synchronous>, transform_indices = @transform_5, window_bounds = array<i64: 1, 1024>}, {pipeline_mode = #tpu.pipeline_mode<synchronous>, transform_indices = @transform_6, window_bounds = array<i64: 1, 1024>}]} {
    %c1_i32 = arith.constant 1 : i32
    %0 = arith.muli %arg1, %c1_i32 : i32
    %1 = arith.addi %0, %arg2 : i32
    %c0_i32 = arith.constant 0 : i32
    %2 = arith.cmpi eq, %arg0, %c0_i32 : i32
    %c0_i32_0 = arith.constant 0 : i32
    %3 = arith.cmpi eq, %arg1, %c0_i32_0 : i32
    %4 = arith.andi %2, %3 : i1
    %c0_i32_1 = arith.constant 0 : i32
    %5 = arith.cmpi eq, %arg2, %c0_i32_1 : i32
    %6 = arith.andi %4, %5 : i1
    %7 = arith.extui %6 : i1 to i32
    %c0_i32_2 = arith.constant 0 : i32
    %8 = arith.cmpi ne, %7, %c0_i32_2 : i32
    scf.if %8 {
      %cst = arith.constant 0.000000e+00 : f32
      %18 = vector.broadcast %cst : f32 to vector<8x1xf32>
      %c0 = arith.constant 0 : index
      %c0_8 = arith.constant 0 : index
      %19 = vector.load %arg10[%c0, %c0_8] : memref<8x1xf32, #tpu.memory_space<vmem>>, vector<8x1xf32>
      tpu.vector_store %arg10[%c0, %c0_8], %18 {strides = array<i32>} : memref<8x1xf32, #tpu.memory_space<vmem>>, vector<8x1xf32>,
      %cst_9 = arith.constant 0.000000e+00 : f32
      %20 = vector.broadcast %cst_9 : f32 to vector<8x8xf32>
      %c0_10 = arith.constant 0 : index
      %c0_11 = arith.constant 0 : index
      %21 = vector.load %arg11[%c0_10, %c0_11] : memref<8x8xf32, #tpu.memory_space<vmem>>, vector<8x8xf32>
      tpu.vector_store %arg11[%c0_10, %c0_11], %20 {strides = array<i32>} : memref<8x8xf32, #tpu.memory_space<vmem>>, vector<8x8xf32>,
      %cst_12 = arith.constant 0.000000e+00 : f32
      %22 = vector.broadcast %cst_12 : f32 to vector<1x128xf32>
      %c0_13 = arith.constant 0 : index
      %c0_14 = arith.constant 0 : index
      %23 = vector.load %arg12[%c0_13, %c0_14] : memref<1x128xf32, #tpu.memory_space<vmem>>, vector<1x128xf32>
      tpu.vector_store %arg12[%c0_13, %c0_14], %22 {strides = array<i32>} : memref<1x128xf32, #tpu.memory_space<vmem>>, vector<1x128xf32>,
      %cst_15 = arith.constant 0.000000e+00 : f32
      %24 = vector.broadcast %cst_15 : f32 to vector<1x128xf32>
      %c0_16 = arith.constant 0 : index
      %c0_17 = arith.constant 0 : index
      %25 = vector.load %arg13[%c0_16, %c0_17] : memref<1x128xf32, #tpu.memory_space<vmem>>, vector<1x128xf32>
      tpu.vector_store %arg13[%c0_16, %c0_17], %24 {strides = array<i32>} : memref<1x128xf32, #tpu.memory_space<vmem>>, vector<1x128xf32>,
    } else {
    }
    %c0_i32_3 = arith.constant 0 : i32
    %9 = arith.cmpi eq, %arg0, %c0_i32_3 : i32
    %10 = arith.extui %9 : i1 to i32
    %c0_i32_4 = arith.constant 0 : i32
    %11 = arith.cmpi ne, %10, %c0_i32_4 : i32
    scf.if %11 {
      %c0 = arith.constant 0 : index
      %c0_8 = arith.constant 0 : index
      %18 = vector.load %arg3[%c0, %c0_8] : memref<8x256xf32, #tpu.memory_space<vmem>>, vector<8x256xf32>
      %c0_9 = arith.constant 0 : index
      %c0_10 = arith.constant 0 : index
      %19 = vector.load %arg10[%c0_9, %c0_10] : memref<8x1xf32, #tpu.memory_space<vmem>>, vector<8x1xf32>
      %cst = arith.constant dense<0.000000e+00> : vector<8xf32>
      %20 = vector.multi_reduction <add>, %18, %cst [1] : vector<8x256xf32> to vector<8xf32>
      %21 = vector.shape_cast %20 : vector<8xf32> to vector<8x1xf32>
      %22 = arith.addf %19, %21 : vector<8x1xf32>
      %c0_11 = arith.constant 0 : index
      %c0_12 = arith.constant 0 : index
      %23 = vector.load %arg10[%c0_11, %c0_12] : memref<8x1xf32, #tpu.memory_space<vmem>>, vector<8x1xf32>
      tpu.vector_store %arg10[%c0_11, %c0_12], %22 {strides = array<i32>} : memref<8x1xf32, #tpu.memory_space<vmem>>, vector<8x1xf32>,
      %c0_13 = arith.constant 0 : index
      %c0_14 = arith.constant 0 : index
      %24 = vector.load %arg11[%c0_13, %c0_14] : memref<8x8xf32, #tpu.memory_space<vmem>>, vector<8x8xf32>
      %cst_15 = arith.constant dense<0.000000e+00> : vector<8x8xf32>
      %25 = tpu.matmul %18, %18, %cst_15 {dimension_numbers = #tpu.dot_dimension_numbers<[1], [1], [0], [0], [0, 0, 1, 0], [], []>} : vector<8x256xf32>, vector<8x256xf32>, vector<8x8xf32> -> vector<8x8xf32>
      %26 = arith.addf %24, %25 : vector<8x8xf32>
      %c0_16 = arith.constant 0 : index
      %c0_17 = arith.constant 0 : index
      %27 = vector.load %arg11[%c0_16, %c0_17] : memref<8x8xf32, #tpu.memory_space<vmem>>, vector<8x8xf32>
      tpu.vector_store %arg11[%c0_16, %c0_17], %26 {strides = array<i32>} : memref<8x8xf32, #tpu.memory_space<vmem>>, vector<8x8xf32>,
    } else {
    }
    %c1_i32_5 = arith.constant 1 : i32
    %12 = arith.cmpi eq, %arg0, %c1_i32_5 : i32
    %13 = arith.extui %12 : i1 to i32
    %c0_i32_6 = arith.constant 0 : i32
    %14 = arith.cmpi ne, %13, %c0_i32_6 : i32
    scf.if %14 {
      %c0 = arith.constant 0 : index
      %c0_8 = arith.constant 0 : index
      %18 = vector.load %arg3[%c0, %c0_8] : memref<8x256xf32, #tpu.memory_space<vmem>>, vector<8x256xf32>
      %c0_9 = arith.constant 0 : index
      %c0_10 = arith.constant 0 : index
      %19 = vector.load %arg4[%c0_9, %c0_10] : memref<8x64xf32, #tpu.memory_space<vmem>>, vector<8x64xf32>
      %cst = arith.constant dense<0.000000e+00> : vector<256x64xf32>
      %20 = tpu.matmul %18, %19, %cst {dimension_numbers = #tpu.dot_dimension_numbers<[0], [0], [1], [1], [0, 1, 1, 1], [], []>} : vector<8x256xf32>, vector<8x64xf32>, vector<256x64xf32> -> vector<256x64xf32>
      %c0_11 = arith.constant 0 : index
      %c0_12 = arith.constant 0 : index
      %21 = vector.load %arg4[%c0_11, %c0_12] : memref<8x64xf32, #tpu.memory_space<vmem>>, vector<8x64xf32>
      %c0_13 = arith.constant 0 : index
      %c0_14 = arith.constant 0 : index
      %22 = vector.load %arg10[%c0_13, %c0_14] : memref<8x1xf32, #tpu.memory_space<vmem>>, vector<8x1xf32>
      %cst_15 = arith.constant dense<0.000000e+00> : vector<1x64xf32>
      %23 = tpu.matmul %22, %21, %cst_15 {dimension_numbers = #tpu.dot_dimension_numbers<[0], [0], [1], [1], [0, 1, 1, 1], [], []>} : vector<8x1xf32>, vector<8x64xf32>, vector<1x64xf32> -> vector<1x64xf32>
      %c0_16 = arith.constant 0 : index
      %c0_17 = arith.constant 0 : index
      %24 = vector.load %arg11[%c0_16, %c0_17] : memref<8x8xf32, #tpu.memory_space<vmem>>, vector<8x8xf32>
      %cst_18 = arith.constant dense<0.000000e+00> : vector<8x64xf32>
      %25 = tpu.matmul %24, %21, %cst_18 {dimension_numbers = #tpu.dot_dimension_numbers<[1], [0], [0], [1], [0, 0, 1, 1], [], []>} : vector<8x8xf32>, vector<8x64xf32>, vector<8x64xf32> -> vector<8x64xf32>
      %26 = arith.mulf %25, %21 : vector<8x64xf32>
      %cst_19 = arith.constant dense<0.000000e+00> : vector<64xf32>
      %27 = vector.multi_reduction <add>, %26, %cst_19 [0] : vector<8x64xf32> to vector<64xf32>
      %28 = vector.shape_cast %27 : vector<64xf32> to vector<1x64xf32>
      %cst_20 = arith.constant 5.120000e+02 : f32
      %29 = vector.broadcast %cst_20 : f32 to vector<1x64xf32>
      %30 = arith.divf %23, %29 : vector<1x64xf32>
      %cst_21 = arith.constant 5.120000e+02 : f32
      %31 = vector.broadcast %cst_21 : f32 to vector<1x64xf32>
      %32 = arith.divf %28, %31 : vector<1x64xf32>
      %33 = arith.mulf %30, %30 : vector<1x64xf32>
      %34 = arith.subf %32, %33 : vector<1x64xf32>
      %cst_22 = arith.constant 9.99999974E-6 : f32
      %35 = vector.broadcast %cst_22 : f32 to vector<1x64xf32>
      %36 = arith.addf %34, %35 : vector<1x64xf32>
      %37 = math.rsqrt %36 : vector<1x64xf32>
      %38 = vector.broadcast %30 : vector<1x64xf32> to vector<256x64xf32>
      %39 = arith.subf %20, %38 : vector<256x64xf32>
      %40 = vector.broadcast %37 : vector<1x64xf32> to vector<256x64xf32>
      %41 = arith.mulf %39, %40 : vector<256x64xf32>
      %cst_23 = arith.constant 0.000000e+00 : f32
      %42 = vector.broadcast %cst_23 : f32 to vector<256x64xf32>
      %43 = arith.cmpf ogt, %41, %42 : vector<256x64xf32>
      %cst_24 = arith.constant 2.000000e-01 : f32
      %44 = vector.broadcast %cst_24 : f32 to vector<256x64xf32>
      %45 = arith.mulf %44, %41 : vector<256x64xf32>
      %46 = arith.select %43, %41, %45 : vector<256x64xi1>, vector<256x64xf32>
      %c0_25 = arith.constant 0 : index
      %c0_26 = arith.constant 0 : index
      %47 = vector.load %arg5[%c0_25, %c0_26] : memref<64x128xf32, #tpu.memory_space<vmem>>, vector<64x128xf32>
      %cst_27 = arith.constant dense<0.000000e+00> : vector<256x128xf32>
      %48 = tpu.matmul %46, %47, %cst_27 {dimension_numbers = #tpu.dot_dimension_numbers<[1], [0], [0], [1], [0, 0, 1, 1], [], []>} : vector<256x64xf32>, vector<64x128xf32>, vector<256x128xf32> -> vector<256x128xf32>
      %c0_28 = arith.constant 0 : index
      %c0_29 = arith.constant 0 : index
      %49 = vector.load %arg12[%c0_28, %c0_29] : memref<1x128xf32, #tpu.memory_space<vmem>>, vector<1x128xf32>
      %cst_30 = arith.constant dense<0.000000e+00> : vector<128xf32>
      %50 = vector.multi_reduction <add>, %48, %cst_30 [0] : vector<256x128xf32> to vector<128xf32>
      %51 = vector.shape_cast %50 : vector<128xf32> to vector<1x128xf32>
      %52 = arith.addf %49, %51 : vector<1x128xf32>
      %c0_31 = arith.constant 0 : index
      %c0_32 = arith.constant 0 : index
      %53 = vector.load %arg12[%c0_31, %c0_32] : memref<1x128xf32, #tpu.memory_space<vmem>>, vector<1x128xf32>
      tpu.vector_store %arg12[%c0_31, %c0_32], %52 {strides = array<i32>} : memref<1x128xf32, #tpu.memory_space<vmem>>, vector<1x128xf32>,
      %c0_33 = arith.constant 0 : index
      %c0_34 = arith.constant 0 : index
      %54 = vector.load %arg13[%c0_33, %c0_34] : memref<1x128xf32, #tpu.memory_space<vmem>>, vector<1x128xf32>
      %55 = arith.mulf %48, %48 : vector<256x128xf32>
      %cst_35 = arith.constant dense<0.000000e+00> : vector<128xf32>
      %56 = vector.multi_reduction <add>, %55, %cst_35 [0] : vector<256x128xf32> to vector<128xf32>
      %57 = vector.shape_cast %56 : vector<128xf32> to vector<1x128xf32>
      %58 = arith.addf %54, %57 : vector<1x128xf32>
      %c0_36 = arith.constant 0 : index
      %c0_37 = arith.constant 0 : index
      %59 = vector.load %arg13[%c0_36, %c0_37] : memref<1x128xf32, #tpu.memory_space<vmem>>, vector<1x128xf32>
      tpu.vector_store %arg13[%c0_36, %c0_37], %58 {strides = array<i32>} : memref<1x128xf32, #tpu.memory_space<vmem>>, vector<1x128xf32>,
      %60 = vector.shape_cast %48 : vector<256x128xf32> to vector<32x8x128xf32>
      %cst_38 = arith.constant dense<0xFF800000> : vector<32x128xf32>
      %61 = vector.multi_reduction <maximumf>, %60, %cst_38 [1] : vector<32x8x128xf32> to vector<32x128xf32>
      %62 = arith.index_cast %1 : i32 to index
      %c0_39 = arith.constant 0 : index
      %c0_40 = arith.constant 0 : index
      %63 = vector.load %arg14[%62, %c0_39, %c0_40] : memref<2x32x128xf32, #tpu.memory_space<vmem>>, vector<1x32x128xf32>
      %64 = vector.shape_cast %63 : vector<1x32x128xf32> to vector<32x128xf32>
      %65 = vector.shape_cast %61 : vector<32x128xf32> to vector<1x32x128xf32>
      tpu.vector_store %arg14[%62, %c0_39, %c0_40], %65 {strides = array<i32>} : memref<2x32x128xf32, #tpu.memory_space<vmem>>, vector<1x32x128xf32>,
    } else {
    }
    %c2_i32 = arith.constant 2 : i32
    %15 = arith.cmpi eq, %arg0, %c2_i32 : i32
    %16 = arith.extui %15 : i1 to i32
    %c0_i32_7 = arith.constant 0 : i32
    %17 = arith.cmpi ne, %16, %c0_i32_7 : i32
    scf.if %17 {
      %c0_i32_8 = arith.constant 0 : i32
      %18 = arith.cmpi eq, %arg1, %c0_i32_8 : i32
      %c0_i32_9 = arith.constant 0 : i32
      %19 = arith.cmpi eq, %arg2, %c0_i32_9 : i32
      %20 = arith.andi %18, %19 : i1
      %21 = arith.extui %20 : i1 to i32
      %c0_i32_10 = arith.constant 0 : i32
      %22 = arith.cmpi ne, %21, %c0_i32_10 : i32
      scf.if %22 {
        %cst_42 = arith.constant 0.000000e+00 : f32
        %70 = vector.broadcast %cst_42 : f32 to vector<1x1024xf32>
        %c0_43 = arith.constant 0 : index
        %c0_44 = arith.constant 0 : index
        %71 = vector.load %arg8[%c0_43, %c0_44] : memref<1x1024xf32, #tpu.memory_space<vmem>>, vector<1x1024xf32>
        tpu.vector_store %arg8[%c0_43, %c0_44], %70 {strides = array<i32>} : memref<1x1024xf32, #tpu.memory_space<vmem>>, vector<1x1024xf32>,
        %cst_45 = arith.constant 0.000000e+00 : f32
        %72 = vector.broadcast %cst_45 : f32 to vector<1x1024xf32>
        %c0_46 = arith.constant 0 : index
        %c0_47 = arith.constant 0 : index
        %73 = vector.load %arg9[%c0_46, %c0_47] : memref<1x1024xf32, #tpu.memory_space<vmem>>, vector<1x1024xf32>
        tpu.vector_store %arg9[%c0_46, %c0_47], %72 {strides = array<i32>} : memref<1x1024xf32, #tpu.memory_space<vmem>>, vector<1x1024xf32>,
      } else {
      }
      %c0_i32_11 = arith.constant 0 : i32
      %23 = arith.cmpi eq, %arg2, %c0_i32_11 : i32
      %24 = arith.extui %23 : i1 to i32
      %c0_i32_12 = arith.constant 0 : i32
      %25 = arith.cmpi ne, %24, %c0_i32_12 : i32
      scf.if %25 {
        %cst_42 = arith.constant 0xFF800000 : f32
        %70 = vector.broadcast %cst_42 : f32 to vector<1x1024xf32>
        %c0_43 = arith.constant 0 : index
        %c0_44 = arith.constant 0 : index
        %71 = vector.load %arg15[%c0_43, %c0_44] : memref<1x1024xf32, #tpu.memory_space<vmem>>, vector<1x1024xf32>
        tpu.vector_store %arg15[%c0_43, %c0_44], %70 {strides = array<i32>} : memref<1x1024xf32, #tpu.memory_space<vmem>>, vector<1x1024xf32>,
      } else {
      }
      %c0 = arith.constant 0 : index
      %c0_13 = arith.constant 0 : index
      %26 = vector.load %arg12[%c0, %c0_13] : memref<1x128xf32, #tpu.memory_space<vmem>>, vector<1x128xf32>
      %c0_14 = arith.constant 0 : index
      %c0_15 = arith.constant 0 : index
      %27 = vector.load %arg13[%c0_14, %c0_15] : memref<1x128xf32, #tpu.memory_space<vmem>>, vector<1x128xf32>
      %cst = arith.constant 0.001953125 : f32
      %28 = vector.broadcast %cst : f32 to vector<1x128xf32>
      %29 = arith.mulf %26, %28 : vector<1x128xf32>
      %cst_16 = arith.constant 0.001953125 : f32
      %30 = vector.broadcast %cst_16 : f32 to vector<1x128xf32>
      %31 = arith.mulf %27, %30 : vector<1x128xf32>
      %32 = arith.mulf %29, %29 : vector<1x128xf32>
      %33 = arith.subf %31, %32 : vector<1x128xf32>
      %cst_17 = arith.constant 9.99999974E-6 : f32
      %34 = vector.broadcast %cst_17 : f32 to vector<1x128xf32>
      %35 = arith.addf %33, %34 : vector<1x128xf32>
      %36 = math.rsqrt %35 : vector<1x128xf32>
      %37 = arith.index_cast %1 : i32 to index
      %c0_18 = arith.constant 0 : index
      %c0_19 = arith.constant 0 : index
      %38 = vector.load %arg14[%37, %c0_18, %c0_19] : memref<2x32x128xf32, #tpu.memory_space<vmem>>, vector<1x32x128xf32>
      %39 = vector.shape_cast %38 : vector<1x32x128xf32> to vector<32x128xf32>
      %40 = vector.broadcast %29 : vector<1x128xf32> to vector<32x128xf32>
      %41 = arith.subf %39, %40 : vector<32x128xf32>
      %42 = vector.broadcast %36 : vector<1x128xf32> to vector<32x128xf32>
      %43 = arith.mulf %41, %42 : vector<32x128xf32>
      %cst_20 = arith.constant 0.000000e+00 : f32
      %44 = vector.broadcast %cst_20 : f32 to vector<32x128xf32>
      %45 = arith.cmpf ogt, %43, %44 : vector<32x128xf32>
      %cst_21 = arith.constant 2.000000e-01 : f32
      %46 = vector.broadcast %cst_21 : f32 to vector<32x128xf32>
      %47 = arith.mulf %46, %43 : vector<32x128xf32>
      %48 = arith.select %45, %43, %47 : vector<32x128xi1>, vector<32x128xf32>
      %c0_22 = arith.constant 0 : index
      %c0_23 = arith.constant 0 : index
      %49 = vector.load %arg6[%c0_22, %c0_23] : memref<128x1024xf32, #tpu.memory_space<vmem>>, vector<128x1024xf32>
      %cst_24 = arith.constant dense<0.000000e+00> : vector<32x1024xf32>
      %50 = tpu.matmul %48, %49, %cst_24 {dimension_numbers = #tpu.dot_dimension_numbers<[1], [0], [0], [1], [0, 0, 1, 1], [], []>} : vector<32x128xf32>, vector<128x1024xf32>, vector<32x1024xf32> -> vector<32x1024xf32>
      %c0_25 = arith.constant 0 : index
      %c0_26 = arith.constant 0 : index
      %51 = vector.load %arg8[%c0_25, %c0_26] : memref<1x1024xf32, #tpu.memory_space<vmem>>, vector<1x1024xf32>
      %cst_27 = arith.constant dense<0.000000e+00> : vector<1024xf32>
      %52 = vector.multi_reduction <add>, %50, %cst_27 [0] : vector<32x1024xf32> to vector<1024xf32>
      %53 = vector.shape_cast %52 : vector<1024xf32> to vector<1x1024xf32>
      %54 = arith.addf %51, %53 : vector<1x1024xf32>
      %c0_28 = arith.constant 0 : index
      %c0_29 = arith.constant 0 : index
      %55 = vector.load %arg8[%c0_28, %c0_29] : memref<1x1024xf32, #tpu.memory_space<vmem>>, vector<1x1024xf32>
      tpu.vector_store %arg8[%c0_28, %c0_29], %54 {strides = array<i32>} : memref<1x1024xf32, #tpu.memory_space<vmem>>, vector<1x1024xf32>,
      %c0_30 = arith.constant 0 : index
      %c0_31 = arith.constant 0 : index
      %56 = vector.load %arg9[%c0_30, %c0_31] : memref<1x1024xf32, #tpu.memory_space<vmem>>, vector<1x1024xf32>
      %57 = arith.mulf %50, %50 : vector<32x1024xf32>
      %cst_32 = arith.constant dense<0.000000e+00> : vector<1024xf32>
      %58 = vector.multi_reduction <add>, %57, %cst_32 [0] : vector<32x1024xf32> to vector<1024xf32>
      %59 = vector.shape_cast %58 : vector<1024xf32> to vector<1x1024xf32>
      %60 = arith.addf %56, %59 : vector<1x1024xf32>
      %c0_33 = arith.constant 0 : index
      %c0_34 = arith.constant 0 : index
      %61 = vector.load %arg9[%c0_33, %c0_34] : memref<1x1024xf32, #tpu.memory_space<vmem>>, vector<1x1024xf32>
      tpu.vector_store %arg9[%c0_33, %c0_34], %60 {strides = array<i32>} : memref<1x1024xf32, #tpu.memory_space<vmem>>, vector<1x1024xf32>,
      %c0_35 = arith.constant 0 : index
      %c0_36 = arith.constant 0 : index
      %62 = vector.load %arg15[%c0_35, %c0_36] : memref<1x1024xf32, #tpu.memory_space<vmem>>, vector<1x1024xf32>
      %cst_37 = arith.constant dense<0xFF800000> : vector<1024xf32>
      %63 = vector.multi_reduction <maximumf>, %50, %cst_37 [0] : vector<32x1024xf32> to vector<1024xf32>
      %64 = vector.shape_cast %63 : vector<1024xf32> to vector<1x1024xf32>
      %65 = arith.maximumf %62, %64 : vector<1x1024xf32>
      %c0_38 = arith.constant 0 : index
      %c0_39 = arith.constant 0 : index
      %66 = vector.load %arg15[%c0_38, %c0_39] : memref<1x1024xf32, #tpu.memory_space<vmem>>, vector<1x1024xf32>
      tpu.vector_store %arg15[%c0_38, %c0_39], %65 {strides = array<i32>} : memref<1x1024xf32, #tpu.memory_space<vmem>>, vector<1x1024xf32>,
      %c0_i32_40 = arith.constant 0 : i32
      %67 = arith.cmpi eq, %arg2, %c0_i32_40 : i32
      %68 = arith.extui %67 : i1 to i32
      %c0_i32_41 = arith.constant 0 : i32
      %69 = arith.cmpi ne, %68, %c0_i32_41 : i32
      scf.if %69 {
        %70 = tpu.iota {dimensions = array<i32: 0>} : vector<2x1024xi32>
        %71 = vector.broadcast %arg1 : i32 to vector<2x1024xi32>
        %72 = arith.cmpi eq, %70, %71 : vector<2x1024xi32>
        %c0_42 = arith.constant 0 : index
        %c0_43 = arith.constant 0 : index
        %73 = vector.load %arg15[%c0_42, %c0_43] : memref<1x1024xf32, #tpu.memory_space<vmem>>, vector<1x1024xf32>
        %c0_44 = arith.constant 0 : index
        %c0_45 = arith.constant 0 : index
        %74 = vector.load %arg7[%c0_44, %c0_45] : memref<2x1024xf32, #tpu.memory_space<vmem>>, vector<2x1024xf32>
        %75 = vector.shape_cast %73 : vector<1x1024xf32> to vector<1x1024xf32>
        %76 = vector.broadcast %75 : vector<1x1024xf32> to vector<2x1024xf32>
        %77 = arith.select %72, %76, %74 : vector<2x1024xi1>, vector<2x1024xf32>
        %c0_46 = arith.constant 0 : index
        %c0_47 = arith.constant 0 : index
        %78 = vector.load %arg7[%c0_46, %c0_47] : memref<2x1024xf32, #tpu.memory_space<vmem>>, vector<2x1024xf32>
        tpu.vector_store %arg7[%c0_46, %c0_47], %77 {strides = array<i32>} : memref<2x1024xf32, #tpu.memory_space<vmem>>, vector<2x1024xf32>,
      } else {
      }
    } else {
    }
    return
  }
  func.func @transform_0(%arg0: i32, %arg1: i32, %arg2: i32) -> (i32, i32) {
    %c2_i32 = arith.constant 2 : i32
    %0 = arith.cmpi slt, %arg0, %c2_i32 : i32
    %c1_i32 = arith.constant 1 : i32
    %1 = arith.muli %arg1, %c1_i32 : i32
    %2 = arith.addi %1, %arg2 : i32
    %c0_i32 = arith.constant 0 : i32
    %3 = arith.select %0, %2, %c0_i32 : i32
    %c0_i32_0 = arith.constant 0 : i32
    %c0_i32_1 = arith.constant 0 : i32
    return %c0_i32_0, %3 : i32, i32
  }
  func.func @transform_1(%arg0: i32, %arg1: i32, %arg2: i32) -> (i32, i32) {
    %c0_i32 = arith.constant 0 : i32
    %c0_i32_0 = arith.constant 0 : i32
    %c0_i32_1 = arith.constant 0 : i32
    return %c0_i32, %c0_i32_0 : i32, i32
  }
  func.func @transform_2(%arg0: i32, %arg1: i32, %arg2: i32) -> (i32, i32) {
    %c0_i32 = arith.constant 0 : i32
    %c0_i32_0 = arith.constant 0 : i32
    %c0_i32_1 = arith.constant 0 : i32
    return %c0_i32, %c0_i32_0 : i32, i32
  }
  func.func @transform_3(%arg0: i32, %arg1: i32, %arg2: i32) -> (i32, i32) {
    %c0_i32 = arith.constant 0 : i32
    %c0_i32_0 = arith.constant 0 : i32
    %c0_i32_1 = arith.constant 0 : i32
    return %c0_i32, %c0_i32_0 : i32, i32
  }
  func.func @transform_4(%arg0: i32, %arg1: i32, %arg2: i32) -> (i32, i32) {
    %c0_i32 = arith.constant 0 : i32
    %c0_i32_0 = arith.constant 0 : i32
    %c0_i32_1 = arith.constant 0 : i32
    return %c0_i32, %c0_i32_0 : i32, i32
  }
  func.func @transform_5(%arg0: i32, %arg1: i32, %arg2: i32) -> (i32, i32) {
    %c0_i32 = arith.constant 0 : i32
    %c0_i32_0 = arith.constant 0 : i32
    %c0_i32_1 = arith.constant 0 : i32
    return %c0_i32, %c0_i32_0 : i32, i32
  }
  func.func @transform_6(%arg0: i32, %arg1: i32, %arg2: i32) -> (i32, i32) {
    %c0_i32 = arith.constant 0 : i32
    %c0_i32_0 = arith.constant 0 : i32
    %c0_i32_1 = arith.constant 0 : i32
    return %c0_i32, %c0_i32_0 : i32, i32
  }
}

</mosaic_0001>

<bundles_post_ra>
// kernel: transform_net.1
= control target key start
LH: loop header
LB: loop body
LE: loop exit
PB: predicated region body
PF: predicated region fallthrough
CT: control target
= control target key end

     0   :  { %12 = vsyncpa [#allocation9], 0  ;;  %s4333_s0 = inlined_call_operand.vmem [shape: f32[8,512], index: 0, kind: input, shape index: {}]   ;;  %s4334_s1 = inlined_call_operand.vmem [shape: f32[8,64], index: 1, kind: input, shape index: {}]   ;;  %s4335_s2 = inlined_call_operand.hbm [shape: f32[64,128], index: 2, kind: input, shape index: {}]   ;;  %s4336_s3 = inlined_call_operand.hbm [shape: f32[128,1024], index: 3, kind: input, shape index: {}]   ;;  %s4337_s4 = inlined_call_operand.vmem [shape: f32[2,1024], index: 4, kind: output, shape index: {0}]   ;;  %s4338_s5 = inlined_call_operand.vmem [shape: f32[1,1024], index: 5, kind: output, shape index: {1}]   ;;  %s4339_s6 = inlined_call_operand.vmem [shape: f32[1,1024], index: 6, kind: output, shape index: {2}]  }
   0x1   :  { %13 = vsyncpa [#allocation11], 0  ;;  %s3749_s21 = smov 0   ;;  %s3751_s22 = smov 0  }
   0x2   :  { %s3753_s23 = smov 0   ;;  %s3755_s24 = smov 0  }
   0x3   :  { %s3757_s25 = smov 0  }
   0x4 LB: > { %s3080_s26 = sadd.s32 4294967295, %s3699_s25   ;;  %s34_s27 = sadd.s32 1, %s3691_s23  ;;  %s3699_s25 = sphi %s3757_s25, %s19_s25   ;;  %s3695_s24 = sphi %s3755_s24, %s4353_s24   ;;  %s3691_s23 = sphi %s3753_s23, %s4352_s23   ;;  %s3687_s22 = sphi %s3751_s22, %s4351_s22   ;;  %s3683_s21 = sphi %s3749_s21, %s4350_s21  }
   0x5   : > { %p36_p0 = scmp.ge.s32.totalorder %s34_s27, 2  ;;  %s38_s28 = sadd.s32 1, %s3695_s24 }
   0x6   : > { %p3081_p1 = scmp.ge.s32.totalorder %s3699_s25, 1  ;;  %p201_p2 = scmp.lt.s32.totalorder %s3699_s25, 7 }
   0x7   : > { %s4355_s27 = smov (%p36_p0, %s34_s27), 0  ;;  %s4357_s28 = smov (!%p36_p0, %s38_s28), %s3695_s24 }
   0x8   : > { %p3782_p3 = pnand %p3081_p1, %p201_p2  ;;  %p40_p4 = scmp.ge.s32.totalorder %s4357_s28, 3 }
   0x9   : > { %p3786_p5 = scmp.eq.s32.totalorder %s3080_s26, 0  ;;  %s3701_s7 = smov [#allocation8]  }
   0xa   : > { %s4343_s29 = scalar_select %p3782_p3, 1, 0 }
   0xb   : > { %s4344_s30 = scalar_select %p3786_p5, 1, 0 }
   0xc   : > { %p3527_p6 = pneg %p3782_p3  ;;  %s4359_s28 = smov (%p40_p4, %s4357_s28), 0 }
   0xd   : > { %s216_s8 = sshll.u32 %s3701_s7, 4  ;;  %s3597_s12 = scalar_lea.hbm %s4335_s2, 1024  ;;  %s217_s8 = int_to_ptr.vmem [resolvable:$true] %s216_s8 }
   0xe   : > { %p3796_p7 = pnand %p3786_p5, %p3527_p6  ;;  %p3598_p8 = scmp.ne.s32.totalorder %s4335_s2, %s3597_s12 }
   0xf   : > { %p3604_p12 = scmp.lt.u32.totalorder %s3597_s12, %s4335_s2 }
  0x10   : > { %p3599_p9 = pneg %p3796_p7 }
  0x12   : > { %p3600_p10 = pnand %p3599_p9, %p3598_p8 }
  0x14   : > { %p3601_p11 = pneg %p3600_p10 }
  0x16   : > { %p3606_p13 = pnand %p3604_p12, %p3601_p11 }
  0x18   : > { %3609 = shalt.err (!%p3606_p13)
}
  0x19   : > { %s3610_s17 = scalar_lea.vmem %s217_s8, 1024  ;;  %p3618_p4 = scmp.lt.s32.totalorder %s217_s8, %s217_s8 }
  0x1a   : > { %p3611_p0 = scmp.ne.s32.totalorder %s217_s8, %s3610_s17  ;;  %p3619_p6 = scmp.lt.s32.totalorder %s3610_s17, %s3610_s17 }
  0x1c   : > { %p3613_p1 = pnand %p3611_p0, %p3599_p9  ;;  %p3620_p5 = por %p3619_p6, %p3618_p4 }
  0x1e   : > { %p3614_p2 = pneg %p3613_p1 }
  0x20   : > { %p3621_p3 = pnand %p3620_p5, %p3614_p2 }
  0x22   : > { %3624 = shalt.err (!%p3621_p3)
}
  0x23   : > { %s3702_s18 = smov 128   ;;  %s3703_s19 = smov 8  }
  0x24   : > { %3530 = dma.hbm_to_vmem [thread:$0]  (!%p3796_p7), %s4335_s2, 1024, %s217_s8, [#allocation9], %s3702_s18, %s3702_s18, %s3703_s19  }
  0x25   : > { %s3704_s7 = smov [#allocation10]   ;;  %s3625_s13 = scalar_lea.hbm %s4336_s3, 16384 }
  0x26   : > { %s229_s10 = sshll.u32 %s3704_s7, 4  ;;  %p3626_p3 = scmp.ne.s32.totalorder %s4336_s3, %s3625_s13  ;;  %s230_s10 = int_to_ptr.vmem [resolvable:$true] %s229_s10 }
  0x27   : > { %p3632_p10 = scmp.lt.u32.totalorder %s3625_s13, %s4336_s3 }
  0x28   : > { %p3628_p5 = pnand %p3626_p3, %p3599_p9 }
  0x2a   : > { %p3629_p8 = pneg %p3628_p5 }
  0x2c   : > { %p3634_p11 = pnand %p3632_p10, %p3629_p8 }
  0x2e   : > { %3637 = shalt.err (!%p3634_p11)
}
  0x2f   : > { %s3638_s8 = scalar_lea.vmem %s230_s10, 16384  ;;  %p3646_p1 = scmp.lt.s32.totalorder %s230_s10, %s230_s10 }
  0x30   : > { %p3639_p12 = scmp.ne.s32.totalorder %s230_s10, %s3638_s8  ;;  %p3647_p2 = scmp.lt.s32.totalorder %s3638_s8, %s3638_s8 }
  0x32   : > { %p3641_p13 = pnand %p3639_p12, %p3599_p9  ;;  %p3648_p4 = por %p3647_p2, %p3646_p1 }
  0x34   : > { %p3642_p0 = pneg %p3641_p13 }
  0x36   : > { %p3649_p6 = pnand %p3648_p4, %p3642_p0 }
  0x38   : > { %3652 = shalt.err (!%p3649_p6)
}
  0x39   : > { %s3705_s18 = smov 1024   ;;  %s3706_s19 = smov 64  }
  0x3a   : > { %3533 = dma.hbm_to_vmem [thread:$0]  (!%p3796_p7), %s4336_s3, 16384, %s230_s10, [#allocation11], %s3705_s18, %s3705_s18, %s3706_s19  }
  0x3b   : > { %p4346_p3 = scmp.ne.s32.totalorder %s4343_s29, 0 }
  0x3c   : > { %p4347_p5 = scmp.ne.s32.totalorder (!%p4346_p3), %s4344_s30, 0 }
  0x3d   : > { %260 = sbr.rel (%p4346_p3) target bundleno = 1367 (0x557), region = 36 }
  0x44   : > { %3674 = dma.done.wait (%p4347_p5), [#allocation9], 1024  }
  0x45   : > { %3676 = vsyncadd (%p4347_p5), [#allocation9], 4294966272 }
  0x46   : > { %3678 = dma.done.wait (%p4347_p5), [#allocation11], 16384  }
  0x47   : > { %3680 = vsyncadd (%p4347_p5), [#allocation11], 4294950912  ;;  %p292_p7 = scmp.lt.s32.totalorder %s3687_s22, 2  ;;  %p305_p9 = scmp.eq.s32.totalorder %s3687_s22, 0 }
  0x48   : > { %p306_p8 = scmp.eq.s32.totalorder %s3683_s21, 0 }
  0x49   : > { %s294_s29 = scalar_select %p292_p7, %s3683_s21, 0 }
  0x4a   : > { %p307_p10 = pnand %p306_p8, %p305_p9 }
  0x4b   : > { %s3088_s9 = sshll.u32 %s294_s29, 1  ;;  %vm314_vm0 = vcmask (!%p307_p10), 7168   ;;  %vm316_vm1 = vcmask (!%p307_p10), 64512   ;;  %v3707_v0 = vmov (!%p307_p10), 0.0  }
  0x4c   : > { %p296_p11 = scmp.lt.s32.totalorder %s3088_s9, 3  ;;  %313 = sbr.rel (%p307_p10) target bundleno = 83 (0x53), region = 48  ;;  %315 = vst.msk [vmem:[#allocation2] sm:$0xff] (!%p307_p10), %vm314_vm0, %v3707_v0  ;;  %318 = vst [vmem:[#allocation4] sm:$0x1] (!%p307_p10), %v3707_v0 }
  0x4d   : > { %319 = vst [vmem:[#allocation5] sm:$0x1] (!%p307_p10), %v3707_v0  ;;  %317 = vst.msk [vmem:[#allocation3] sm:$0xff] (!%p307_p10), %vm316_vm1, %v3707_v0 }
  0x4e   : > { %s4361_s9 = smov (!%p296_p11, %s3088_s9), 3 }
  0x4f   : > { %s3089_s7 = sshll.u32 %s4361_s9, 3 }
  0x50   : > { %s3861_s30 = scalar_lea.vmem %s4333_s0, %s3089_s7 }
  0x53 PF: > { %p3091_p12 = scmp.ne.s32.totalorder %s3687_s22, 0 }
  0x54   : > { %v324_v1 = vld [vmem:[%s3861_s30 + $0x8] sm:$0xff] (!%p3091_p12)  ;;  %v323_v2 = vld [vmem:[%s3861_s30] sm:$0xff] (!%p3091_p12)  ;;  %vm330_vm2 = vcmask (!%p3091_p12), 7168   ;;  %vm404_vm3 = vcmask (!%p3091_p12), 64512  }
  0x55   : > { %322 = sbr.rel (%p3091_p12) target bundleno = 304 (0x130), region = 52  ;;  %333 = vmatprep.subr.mxu0 (!%p3091_p12), %v324_v1  ;;  %397 = vmatprep.mubr.f32.mxu0 (!%p3091_p12), %v324_v1  ;;  %v326_v3 = vadd.f32 (!%p3091_p12), %v324_v1, %v323_v2  ;;  %v325_v4 = vld [vmem:[#allocation2] sm:$0xff] (!%p3091_p12)  ;;  %v332_v7 = vld [vmem:[#allocation3] sm:$0xff] (!%p3091_p12) }
  0x56   : > { %334 = vmatpush1.xpose.msra.mxu0 (!%p3091_p12), %v323_v2 }
  0x57   : > { %327 = vadd.xlane.f32.xlu0 (!%p3091_p12), %v326_v3 }
  0x59   : > { %398 = vmatmul.mubr.f32.vlgmr.msra.gmra.mrb[0].mxu0 (!%p3091_p12), %v323_v2 }
  0xe4   : > { %v328_v5 = vpop.xlane.xlu0 %327 }
  0xe5   : > { %v329_v6 = vadd.f32 %v328_v5, %v325_v4 }
  0xe7   : > { %331 = vst.msk [vmem:[#allocation2] sm:$0xff] %vm330_vm2, %v329_v6 }
 0x12c   : > { %v399_v8 = vpop.f32.mrb[0].mxu0 }
 0x12d   : > { %v403_v9 = vadd.f32 %v399_v8, %v332_v7  ;;  %v401_v10 = vpop.f32.mrb[1].mxu0 }
 0x12f   : > { %405 = vst.msk [vmem:[#allocation3] sm:$0xff] %vm404_vm3, %v403_v9 }
 0x130 PF: > { %p3092_p13 = scmp.ne.s32.totalorder %s3687_s22, 1 }
 0x131   : > { %v799_v11 = vld [vmem:[#allocation2] sm:$0xff] (!%p3092_p13)  ;;  %v411_v12 = vld [vmem:[%s3861_s30 + $0x8] sm:$0xff] (!%p3092_p13)  ;;  %v3708_v15 = vmov (!%p3092_p13), 0.0   ;;  %vm3709_vm4 = vmmov (!%p3092_p13), 0   ;;  %v1163_v16 = vld [vmem:[#allocation8] sm:$0xff] (!%p3092_p13)  ;;  %vm477_vm5 = vcmask (!%p3092_p13), 64512   ;;  %v995_v62 = vlaneseq (!%p3092_p13) }
 0x132   : > { %409 = sbr.rel (%p3092_p13) target bundleno = 998 (0x3e6), region = 56  ;;  %800 = vxpose.xlu0.b32.start.end [1/1] (short) (narrow) (!%p3092_p13), %v799_v11, 8  ;;  %445 = vxpose.xlu1.b32.start.end [1/1] (short) (!%p3092_p13), %v411_v12, 128  ;;  %v3871_v13 = vld [vmem:[%s4334_s1] sm:$0xff] (!%p3092_p13)  ;;  %v1166_v21 = vld [vmem:[#allocation8 + $0x18] sm:$0xff] (!%p3092_p13)  ;;  %v1167_v56 = vld [vmem:[#allocation8 + $0x20] sm:$0xff] (!%p3092_p13)  ;;  %vm980_vm6 = vcmask (!%p3092_p13), 523264  }
 0x133   : > { %v410_v14 = vld [vmem:[%s3861_s30] sm:$0xff] (!%p3092_p13)  ;;  %3293 = vmatprep.subr.mxu1 (!%p3092_p13), %v3708_v15  ;;  %3295 = vmatprep.mubr.msk.f32.mxu1 (!%p3092_p13), %vm3709_vm4, %v3708_v15  ;;  %v1170_v60 = vld [vmem:[#allocation8 + $0x38] sm:$0xff] (!%p3092_p13)  ;;  %v996_v63 = vshrl.u32 (!%p3092_p13), %v995_v62, 7  ;;  %s3159_s14 = sshll.u32 (!%p3092_p13), %s3683_s21, 5 }
 0x134   : > { %3294 = vmatpush3.msra.mxu1 (!%p3092_p13), %v3871_v13  ;;  %3243 = vmatprep.subr.mxu0 (!%p3092_p13), %v3871_v13  ;;  %v1164_v17 = vld [vmem:[#allocation8 + $0x8] sm:$0xff] (!%p3092_p13)  ;;  %v1165_v20 = vld [vmem:[#allocation8 + $0x10] sm:$0xff] (!%p3092_p13)  ;;  %s4041_s15 = scalar_lea.vmem (!%p3092_p13), [#allocation6], %s3159_s14 }
 0x135   : > { %3298 = vmatprep.subr.mxu1 (!%p3092_p13), %v3708_v15  ;;  %3244 = vmatpush3.msra.mxu0 (!%p3092_p13), %v3871_v13  ;;  %v3367_v18 = vpack.c.bf16 (!%p3092_p13), %v1164_v17, %v1163_v16  ;;  %v3371_v23 = vpack.c.bf16 (!%p3092_p13), %v1166_v21, %v1165_v20  ;;  %v1168_v57 = vld [vmem:[#allocation8 + $0x28] sm:$0xff] (!%p3092_p13)  ;;  %v1169_v59 = vld [vmem:[#allocation8 + $0x30] sm:$0xff] (!%p3092_p13)  ;;  %v997_v3 = vsub.s32 (!%p3092_p13), 0, %v996_v63 }
 0x136   : > { %413 = vxpose.xlu0.b32.start.end [1/1] (short) (!%p3092_p13), %v410_v14, 128  ;;  %v905_v22 = vld [vmem:[#allocation3] sm:$0xff] (!%p3092_p13)  ;;  %v3375_v58 = vpack.c.bf16 (!%p3092_p13), %v1168_v57, %v1167_v56  ;;  %v3379_v61 = vpack.c.bf16 (!%p3092_p13), %v1170_v60, %v1169_v59 }
 0x137   : > { %3368 = vmatprep.subr.bf16.mxu0 (!%p3092_p13), %v3367_v18 }
 0x1b2   : > { %v816_v19 = vpop.trf.xlu0  ;;  %v461_v25 = vpop.trf.xlu1 }
 0x1b3   : > { %3296 = vmatmul.mubr.msk.f32.vlgmr.msra.gmra.mrb[0].mxu1 %vm477_vm5, %v816_v19 }
 0x1b4   : > { %3299 = vmatpush3.msra.mxu1 %v3871_v13  ;;  %3300 = vmatprep.mubr.msk.f32.mxu1 %vm3709_vm4, %v3708_v15 }
 0x1b5   : > { %3511 = vmatprep.subr.bf16.mxu1 %v3367_v18 }
 0x1b6   : > { %v429_v24 = vpop.trf.xlu0  ;;  %v462_v27 = vpop.trf.xlu1 }
 0x1b7   : > { %3245 = vmatprep.mubr.msk.f32.mxu0 %vm477_vm5, %v429_v24  ;;  %3301 = vmatmul.mubr.msk.f32.vlgmr.msra.gmra.mrb[2].mxu1 %vm477_vm5, %v905_v22 }
 0x1b8   : > { %3515 = vmatpush3.bf16.msra.mxu1 %v3367_v18 }
 0x1b9   : > { %3512 = vmatprep.subr.bf16.mxu1 %v3371_v23 }
 0x1ba   : > { %v430_v26 = vpop.trf.xlu0  ;;  %v463_v30 = vpop.trf.xlu1 }
 0x1bb   : > { %3246 = vmatmul.mubr.msk.f32.vlgmr.msra.gmra.mrb[0].mxu0 %vm477_vm5, %v430_v26 }
 0x1bc   : > { %3370 = vmatpush3.bf16.msra.mxu0 %v3367_v18  ;;  %3516 = vmatpush3.bf16.msra.mxu1 %v3371_v23 }
 0x1bd   : > { %3372 = vmatprep.subr.bf16.mxu0 %v3371_v23  ;;  %3513 = vmatprep.subr.bf16.mxu1 %v3375_v58 }
 0x1be   : > { %v431_v28 = vpop.trf.xlu0  ;;  %v464_v32 = vpop.trf.xlu1 }
 0x1bf   : > { %3248 = vmatprep.mubr.msk.f32.mxu0 %vm477_vm5, %v431_v28 }
 0x1c0   : > { %3374 = vmatpush3.bf16.msra.mxu0 %v3371_v23  ;;  %3517 = vmatpush3.bf16.msra.mxu1 %v3375_v58 }
 0x1c1   : > { %3376 = vmatprep.subr.bf16.mxu0 %v3375_v58  ;;  %3514 = vmatprep.subr.bf16.mxu1 %v3379_v61 }
 0x1c2   : > { %v432_v29 = vpop.trf.xlu0  ;;  %v465_v35 = vpop.trf.xlu1 }
 0x1c3   : > { %3249 = vmatmul.mubr.msk.f32.gmra.mrb[2].mxu0 %vm477_vm5, %v432_v29 }
 0x1c4   : > { %3378 = vmatpush3.bf16.msra.mxu0 %v3375_v58  ;;  %3518 = vmatpush3.bf16.msra.mxu1 %v3379_v61 }
 0x1c5   : > { %3380 = vmatprep.subr.bf16.mxu0 %v3379_v61 }
 0x1c6   : > { %v433_v31 = vpop.trf.xlu0  ;;  %v466_v37 = vpop.trf.xlu1 }
 0x1c7   : > { %3251 = vmatprep.mubr.msk.f32.mxu0 %vm477_vm5, %v433_v31 }
 0x1c8   : > { %3382 = vmatpush3.bf16.msra.mxu0 %v3379_v61 }
 0x1ca   : > { %v434_v33 = vpop.trf.xlu0  ;;  %v467_v40 = vpop.trf.xlu1 }
 0x1cb   : > { %3252 = vmatmul.mubr.msk.f32.gmra.mrb[4].mxu0 %vm477_vm5, %v434_v33 }
 0x1ce   : > { %v435_v34 = vpop.trf.xlu0  ;;  %v468_v42 = vpop.trf.xlu1 }
 0x1cf   : > { %3254 = vmatprep.mubr.msk.f32.mxu0 %vm477_vm5, %v435_v34 }
 0x1d2   : > { %v436_v36 = vpop.trf.xlu0  ;;  %v469_v45 = vpop.trf.xlu1 }
 0x1d3   : > { %3255 = vmatmul.mubr.msk.f32.gmra.mrb[6].mxu0 %vm477_vm5, %v436_v36 }
 0x1d6   : > { %v437_v38 = vpop.trf.xlu0  ;;  %v470_v47 = vpop.trf.xlu1 }
 0x1d7   : > { %3257 = vmatprep.mubr.msk.f32.mxu0 %vm477_vm5, %v437_v38 }
 0x1da   : > { %v438_v39 = vpop.trf.xlu0  ;;  %v471_v50 = vpop.trf.xlu1 }
 0x1db   : > { %3258 = vmatmul.mubr.msk.f32.gmra.mrb[8].mxu0 %vm477_vm5, %v438_v39 }
 0x1de   : > { %v439_v41 = vpop.trf.xlu0  ;;  %v472_v51 = vpop.trf.xlu1 }
 0x1df   : > { %3260 = vmatprep.mubr.msk.f32.mxu0 %vm477_vm5, %v439_v41 }
 0x1e2   : > { %v440_v43 = vpop.trf.xlu0  ;;  %v473_v52 = vpop.trf.xlu1 }
 0x1e3   : > { %3261 = vmatmul.mubr.msk.f32.gmra.mrb[10].mxu0 %vm477_vm5, %v440_v43 }
 0x1e6   : > { %v441_v44 = vpop.trf.xlu0  ;;  %v474_v53 = vpop.trf.xlu1 }
 0x1e7   : > { %3263 = vmatprep.mubr.msk.f32.mxu0 %vm477_vm5, %v441_v44 }
 0x1ea   : > { %v442_v46 = vpop.trf.xlu0  ;;  %v475_v54 = vpop.trf.xlu1 }
 0x1eb   : > { %3264 = vmatmul.mubr.msk.f32.gmra.mrb[12].mxu0 %vm477_vm5, %v442_v46 }
 0x1ee   : > { %v443_v48 = vpop.trf.xlu0  ;;  %v476_v55 = vpop.trf.xlu1 }
 0x1ef   : > { %3266 = vmatprep.mubr.msk.f32.mxu0 %vm477_vm5, %v443_v48 }
 0x1f2   : > { %v444_v49 = vpop.trf.xlu0 }
 0x1f3   : > { %3267 = vmatmul.mubr.msk.f32.gmra.mrb[14].mxu0 %vm477_vm5, %v444_v49 }
 0x1f4   : > { %3269 = vmatprep.mubr.msk.f32.mxu0 %vm477_vm5, %v461_v25 }
 0x1f7   : > { %3270 = vmatmul.mubr.msk.f32.gmra.mrb[16].mxu0 %vm477_vm5, %v462_v27 }
 0x1f8   : > { %3272 = vmatprep.mubr.msk.f32.mxu0 %vm477_vm5, %v463_v30 }
 0x1fb   : > { %3273 = vmatmul.mubr.msk.f32.gmra.mrb[18].mxu0 %vm477_vm5, %v464_v32 }
 0x1fc   : > { %3275 = vmatprep.mubr.msk.f32.mxu0 %vm477_vm5, %v465_v35 }
 0x1ff   : > { %3276 = vmatmul.mubr.msk.f32.gmra.mrb[20].mxu0 %vm477_vm5, %v466_v37 }
 0x200   : > { %3278 = vmatprep.mubr.msk.f32.mxu0 %vm477_vm5, %v467_v40 }
 0x203   : > { %3279 = vmatmul.mubr.msk.f32.gmra.mrb[22].mxu0 %vm477_vm5, %v468_v42 }
 0x204   : > { %3281 = vmatprep.mubr.msk.f32.mxu0 %vm477_vm5, %v469_v45 }
 0x207   : > { %3282 = vmatmul.mubr.msk.f32.gmra.mrb[24].mxu0 %vm477_vm5, %v470_v47 }
 0x208   : > { %3284 = vmatprep.mubr.msk.f32.mxu0 %vm477_vm5, %v471_v50 }
 0x20b   : > { %3285 = vmatmul.mubr.msk.f32.gmra.mrb[26].mxu0 %vm477_vm5, %v472_v51 }
 0x20c   : > { %3287 = vmatprep.mubr.msk.f32.mxu0 %vm477_vm5, %v473_v52 }
 0x20f   : > { %3288 = vmatmul.mubr.msk.f32.gmra.mrb[28].mxu0 %vm477_vm5, %v474_v53 }
 0x210   : > { %3290 = vmatprep.mubr.msk.f32.mxu0 %vm477_vm5, %v475_v54 }
 0x213   : > { %3291 = vmatmul.mubr.msk.f32.gmra.mrb[30].mxu0 %vm477_vm5, %v476_v55 }
 0x286   : > { %v901_v0 = vpop.f32.mrb[0].mxu1 }
 0x287   : > { %v3297_v1 = vpop.f32.mrb[1].mxu1  ;;  %v989_v2 = vmul.f32 0.001953125, %v901_v0 }
 0x289   : > { %v3915_v7 = vrot.slane %v989_v2, %v997_v3  ;;  %v991_v23 = vmul.f32 %v989_v2, %v989_v2 }
 0x28a   : > { %v975_v4 = vpop.f32.mrb[2].mxu1 }
 0x28b   : > { %v979_v5 = vmul.f32 %v975_v4, %v3871_v13  ;;  %v3302_v6 = vpop.f32.mrb[3].mxu1 }
 0x28d   : > { %v981_v8 = vsel %vm980_vm6, %v979_v5, 0.0 }
 0x28e   : > { %v982_v9 = vrot.slane %v981_v8, 4  ;;  %v3247_v10 = vpop.f32.mrb[0].mxu0 }
 0x28f   : > { %v1000_v11 = vsub.f32 %v3247_v10, %v3915_v7  ;;  %v640_v12 = vpop.f32.mrb[1].mxu0 }
 0x290   : > { %v983_v14 = vadd.f32 %v982_v9, %v981_v8  ;;  %v999_v15 = vsub.f32 %v640_v12, %v3915_v7 }
 0x292   : > { %v984_v16 = vrot.slane %v983_v14, 2 }
 0x294   : > { %v985_v17 = vadd.f32 %v984_v16, %v983_v14 }
 0x296   : > { %v986_v18 = vrot.slane %v985_v17, 1  ;;  %v3250_v19 = vpop.f32.mrb[2].mxu0 }
 0x297   : > { %v1002_v20 = vsub.f32 %v3250_v19, %v3915_v7  ;;  %v650_v13 = vpop.f32.mrb[3].mxu0 }
 0x298   : > { %v987_v21 = vadd.f32 %v986_v18, %v985_v17  ;;  %v1001_v22 = vsub.f32 %v650_v13, %v3915_v7 }
 0x29a   : > { %v990_v24 = vmul.f32 0.001953125, %v987_v21 }
 0x29c   : > { %v992_v25 = vsub.f32 %v990_v24, %v991_v23 }
 0x29e   : > { %v993_v26 = vadd.f32 1e-05, %v992_v25  ;;  %v3253_v27 = vpop.f32.mrb[4].mxu0 }
 0x29f   : > { %v1004_v28 = vsub.f32 %v3253_v27, %v3915_v7  ;;  %v660_v29 = vpop.f32.mrb[5].mxu0 }
 0x2a0   : > { %3591 = vrsqrt.f32 %v993_v26  ;;  %v1003_v30 = vsub.f32 %v660_v29, %v3915_v7 }
 0x2a6   : > { %v3256_v31 = vpop.f32.mrb[6].mxu0 }
 0x2a7   : > { %v1006_v32 = vsub.f32 %v3256_v31, %v3915_v7  ;;  %v670_v33 = vpop.f32.mrb[7].mxu0 }
 0x2a8   : > { %v1005_v34 = vsub.f32 %v670_v33, %v3915_v7 }
 0x2aa   : > { %v3592_v35 = vpop.eup %3591 }
 0x2ab   : > { %v3926_v36 = vrot.slane %v3592_v35, %v997_v3 }
 0x2ad   : > { %v1036_v37 = vmul.f32 %v3926_v36, %v1000_v11  ;;  %v1035_v38 = vmul.f32 %v3926_v36, %v999_v15  ;;  %v1038_v39 = vmul.f32 %v3926_v36, %v1002_v20  ;;  %v1037_v40 = vmul.f32 %v3926_v36, %v1001_v22 }
 0x2ae   : > { %v1040_v41 = vmul.f32 %v3926_v36, %v1004_v28  ;;  %v1039_v42 = vmul.f32 %v3926_v36, %v1003_v30  ;;  %v1042_v43 = vmul.f32 %v3926_v36, %v1006_v32  ;;  %v1041_v44 = vmul.f32 %v3926_v36, %v1005_v34  ;;  %v3259_v45 = vpop.f32.mrb[8].mxu0 }
 0x2af   : > { %vm1068_vm7 = vcmp.gt.f32.partialorder %v1036_v37, 0.0  ;;  %v1100_v46 = vmul.f32 0.2, %v1036_v37  ;;  %v1099_v47 = vmul.f32 0.2, %v1035_v38  ;;  %v1008_v48 = vsub.f32 %v3259_v45, %v3915_v7  ;;  %v680_v49 = vpop.f32.mrb[9].mxu0 }
 0x2b0   : > { %vm1072_vm8 = vcmp.gt.f32.partialorder %v1040_v41, 0.0  ;;  %v1007_v50 = vsub.f32 %v680_v49, %v3915_v7  ;;  %v1101_v52 = vmul.f32 0.2, %v1037_v40  ;;  %v1104_v53 = vmul.f32 0.2, %v1040_v41 }
 0x2b1   : > { %v1132_v51 = vsel %vm1068_vm7, %v1036_v37, %v1100_v46  ;;  %v1103_v54 = vmul.f32 0.2, %v1039_v42  ;;  %v1105_v55 = vmul.f32 0.2, %v1041_v44  ;;  %v1044_v56 = vmul.f32 %v3926_v36, %v1008_v48 }
 0x2b2   : > { %v1043_v57 = vmul.f32 %v3926_v36, %v1007_v50  ;;  %vm1067_vm9 = vcmp.gt.f32.partialorder %v1035_v38, 0.0  ;;  %vm1071_vm10 = vcmp.gt.f32.partialorder %v1039_v42, 0.0  ;;  %v1136_v59 = vsel %vm1072_vm8, %v1040_v41, %v1104_v53 }
 0x2b3   : > { %v1131_v58 = vsel %vm1067_vm9, %v1035_v38, %v1099_v47  ;;  %vm1069_vm11 = vcmp.gt.f32.partialorder %v1037_v40, 0.0  ;;  %v1102_v60 = vmul.f32 0.2, %v1038_v39  ;;  %v1106_v61 = vmul.f32 0.2, %v1042_v43 }
 0x2b4   : > { %v1107_v62 = vmul.f32 0.2, %v1043_v57  ;;  %3319 = vmatprep.mubr.msk.f32.mxu0 %vm980_vm6, %v1131_v58  ;;  %v1135_v63 = vsel %vm1071_vm10, %v1039_v42, %v1103_v54  ;;  %v1133_v0 = vsel %vm1069_vm11, %v1037_v40, %v1101_v52  ;;  %vm1073_vm12 = vcmp.gt.f32.partialorder %v1041_v44, 0.0 }
 0x2b5   : > { %3325 = vmatprep.mubr.msk.f32.mxu1 %vm980_vm6, %v1135_v63  ;;  %3320 = vmatmul.mubr.msk.f32.vlgmr.msra.gmra.mrb[32].mxu0 %vm980_vm6, %v1132_v51  ;;  %vm1070_vm13 = vcmp.gt.f32.partialorder %v1038_v39, 0.0  ;;  %vm1075_vm14 = vcmp.gt.f32.partialorder %v1043_v57, 0.0  ;;  %v1137_v1 = vsel %vm1073_vm12, %v1041_v44, %v1105_v55  ;;  %vm1074_vm15 = vcmp.gt.f32.partialorder %v1042_v43, 0.0 }
 0x2b6   : > { %3326 = vmatmul.mubr.msk.f32.vlgmr.msra.gmra.mrb[4].mxu1 %vm980_vm6, %v1136_v59  ;;  %3322 = vmatprep.mubr.msk.f32.mxu0 %vm980_vm6, %v1133_v0  ;;  %v3262_v2 = vpop.f32.mrb[10].mxu0  ;;  %v1134_v6 = vsel %vm1070_vm13, %v1038_v39, %v1102_v60  ;;  %v1139_v8 = vsel %vm1075_vm14, %v1043_v57, %v1107_v62  ;;  %v1108_v9 = vmul.f32 0.2, %v1044_v56  ;;  %v1138_v11 = vsel %vm1074_vm15, %v1042_v43, %v1106_v61 }
 0x2b7   : > { %3328 = vmatprep.mubr.msk.f32.mxu1 %vm980_vm6, %v1137_v1  ;;  %v1010_v3 = vsub.f32 %v3262_v2, %v3915_v7  ;;  %v690_v4 = vpop.f32.mrb[11].mxu0  ;;  %vm1076_vm0 = vcmp.gt.f32.partialorder %v1044_v56, 0.0 }
 0x2b8   : > { %v1009_v5 = vsub.f32 %v690_v4, %v3915_v7  ;;  %v1140_v16 = vsel %vm1076_vm0, %v1044_v56, %v1108_v9 }
 0x2b9   : > { %v1046_v10 = vmul.f32 %v3926_v36, %v1010_v3  ;;  %3323 = vmatmul.mubr.msk.f32.gmra.mrb[34].mxu0 %vm980_vm6, %v1134_v6 }
 0x2ba   : > { %v1045_v12 = vmul.f32 %v3926_v36, %v1009_v5  ;;  %3329 = vmatmul.mubr.msk.f32.gmra.mrb[6].mxu1 %vm980_vm6, %v1138_v11 }
 0x2bb   : > { %3331 = vmatprep.mubr.msk.f32.mxu1 %vm980_vm6, %v1139_v8  ;;  %v1110_v15 = vmul.f32 0.2, %v1046_v10  ;;  %vm1078_vm2 = vcmp.gt.f32.partialorder %v1046_v10, 0.0 }
 0x2bc   : > { %v1109_v14 = vmul.f32 0.2, %v1045_v12  ;;  %vm1077_vm1 = vcmp.gt.f32.partialorder %v1045_v12, 0.0 }
 0x2bd   : > { %v1142_v22 = vsel %vm1078_vm2, %v1046_v10, %v1110_v15 }
 0x2be   : > { %3332 = vmatmul.mubr.msk.f32.gmra.mrb[8].mxu1 %vm980_vm6, %v1140_v16  ;;  %v3265_v17 = vpop.f32.mrb[12].mxu0  ;;  %v1141_v18 = vsel %vm1077_vm1, %v1045_v12, %v1109_v14 }
 0x2bf   : > { %v1012_v19 = vsub.f32 %v3265_v17, %v3915_v7  ;;  %v700_v20 = vpop.f32.mrb[13].mxu0  ;;  %3334 = vmatprep.mubr.msk.f32.mxu1 %vm980_vm6, %v1141_v18 }
 0x2c0   : > { %v1011_v13 = vsub.f32 %v700_v20, %v3915_v7 }
 0x2c1   : > { %v1048_v21 = vmul.f32 %v3926_v36, %v1012_v19 }
 0x2c2   : > { %v1047_v23 = vmul.f32 %v3926_v36, %v1011_v13  ;;  %3335 = vmatmul.mubr.msk.f32.gmra.mrb[10].mxu1 %vm980_vm6, %v1142_v22 }
 0x2c3   : > { %v1112_v24 = vmul.f32 0.2, %v1048_v21  ;;  %vm1080_vm4 = vcmp.gt.f32.partialorder %v1048_v21, 0.0 }
 0x2c4   : > { %v1111_v25 = vmul.f32 0.2, %v1047_v23  ;;  %vm1079_vm3 = vcmp.gt.f32.partialorder %v1047_v23, 0.0 }
 0x2c5   : > { %v1144_v30 = vsel %vm1080_vm4, %v1048_v21, %v1112_v24 }
 0x2c6   : > { %v3268_v26 = vpop.f32.mrb[14].mxu0  ;;  %v1143_v27 = vsel %vm1079_vm3, %v1047_v23, %v1111_v25 }
 0x2c7   : > { %v1014_v28 = vsub.f32 %v3268_v26, %v3915_v7  ;;  %v710_v29 = vpop.f32.mrb[15].mxu0  ;;  %3337 = vmatprep.mubr.msk.f32.mxu1 %vm980_vm6, %v1143_v27 }
 0x2c8   : > { %v1013_v31 = vsub.f32 %v710_v29, %v3915_v7  ;;  %3338 = vmatmul.mubr.msk.f32.gmra.mrb[12].mxu1 %vm980_vm6, %v1144_v30 }
 0x2c9   : > { %v1050_v32 = vmul.f32 %v3926_v36, %v1014_v28 }
 0x2ca   : > { %v1049_v33 = vmul.f32 %v3926_v36, %v1013_v31  ;;  %v3271_v34 = vpop.f32.mrb[16].mxu0 }
 0x2cb   : > { %v1114_v35 = vmul.f32 0.2, %v1050_v32  ;;  %v1016_v37 = vsub.f32 %v3271_v34, %v3915_v7  ;;  %v720_v38 = vpop.f32.mrb[17].mxu0  ;;  %vm1082_vm7 = vcmp.gt.f32.partialorder %v1050_v32, 0.0 }
 0x2cc   : > { %v1113_v39 = vmul.f32 0.2, %v1049_v33  ;;  %v1015_v40 = vsub.f32 %v720_v38, %v3915_v7  ;;  %vm1081_vm5 = vcmp.gt.f32.partialorder %v1049_v33, 0.0 }
 0x2cd   : > { %v1052_v41 = vmul.f32 %v3926_v36, %v1016_v37  ;;  %v1146_v48 = vsel %vm1082_vm7, %v1050_v32, %v1114_v35 }
 0x2ce   : > { %v1051_v42 = vmul.f32 %v3926_v36, %v1015_v40  ;;  %v3274_v43 = vpop.f32.mrb[18].mxu0  ;;  %v1145_v44 = vsel %vm1081_vm5, %v1049_v33, %v1113_v39 }
 0x2cf   : > { %v1116_v45 = vmul.f32 0.2, %v1052_v41  ;;  %v1018_v46 = vsub.f32 %v3274_v43, %v3915_v7  ;;  %v730_v47 = vpop.f32.mrb[19].mxu0  ;;  %3340 = vmatprep.mubr.msk.f32.mxu1 %vm980_vm6, %v1145_v44  ;;  %vm1084_vm9 = vcmp.gt.f32.partialorder %v1052_v41, 0.0 }
 0x2d0   : > { %v1115_v49 = vmul.f32 0.2, %v1051_v42  ;;  %v1017_v50 = vsub.f32 %v730_v47, %v3915_v7  ;;  %3341 = vmatmul.mubr.msk.f32.gmra.mrb[14].mxu1 %vm980_vm6, %v1146_v48  ;;  %vm1083_vm8 = vcmp.gt.f32.partialorder %v1051_v42, 0.0 }
 0x2d1   : > { %v1054_v51 = vmul.f32 %v3926_v36, %v1018_v46  ;;  %v1148_v58 = vsel %vm1084_vm9, %v1052_v41, %v1116_v45  ;;  %vm1828_vm9 = vcmask 1041409  }
 0x2d2   : > { %v1053_v52 = vmul.f32 %v3926_v36, %v1017_v50  ;;  %v3277_v53 = vpop.f32.mrb[20].mxu0  ;;  %v1147_v54 = vsel %vm1083_vm8, %v1051_v42, %v1115_v49 }
 0x2d3   : > { %v1118_v55 = vmul.f32 0.2, %v1054_v51  ;;  %v1020_v56 = vsub.f32 %v3277_v53, %v3915_v7  ;;  %v740_v57 = vpop.f32.mrb[21].mxu0  ;;  %3343 = vmatprep.mubr.msk.f32.mxu1 %vm980_vm6, %v1147_v54  ;;  %vm1086_vm11 = vcmp.gt.f32.partialorder %v1054_v51, 0.0 }
 0x2d4   : > { %v1117_v59 = vmul.f32 0.2, %v1053_v52  ;;  %v1019_v60 = vsub.f32 %v740_v57, %v3915_v7  ;;  %3344 = vmatmul.mubr.msk.f32.gmra.mrb[16].mxu1 %vm980_vm6, %v1148_v58  ;;  %vm1085_vm10 = vcmp.gt.f32.partialorder %v1053_v52, 0.0 }
 0x2d5   : > { %v1056_v61 = vmul.f32 %v3926_v36, %v1020_v56  ;;  %v1150_v4 = vsel %vm1086_vm11, %v1054_v51, %v1118_v55  ;;  %vm1834_vm11 = vcmask 1044484  }
 0x2d6   : > { %v1055_v62 = vmul.f32 %v3926_v36, %v1019_v60  ;;  %v3280_v63 = vpop.f32.mrb[22].mxu0  ;;  %v1149_v0 = vsel %vm1085_vm10, %v1053_v52, %v1117_v59  ;;  %vm1832_vm10 = vcmask 1043459  }
 0x2d7   : > { %v1120_v1 = vmul.f32 0.2, %v1056_v61  ;;  %v1022_v2 = vsub.f32 %v3280_v63, %v3915_v7  ;;  %v750_v3 = vpop.f32.mrb[23].mxu0  ;;  %3346 = vmatprep.mubr.msk.f32.mxu1 %vm980_vm6, %v1149_v0  ;;  %vm1088_vm13 = vcmp.gt.f32.partialorder %v1056_v61, 0.0 }
 0x2d8   : > { %v1119_v5 = vmul.f32 0.2, %v1055_v62  ;;  %v1021_v6 = vsub.f32 %v750_v3, %v3915_v7  ;;  %3347 = vmatmul.mubr.msk.f32.gmra.mrb[18].mxu1 %vm980_vm6, %v1150_v4  ;;  %vm1087_vm12 = vcmp.gt.f32.partialorder %v1055_v62, 0.0 }
 0x2d9   : > { %v1058_v8 = vmul.f32 %v3926_v36, %v1022_v2  ;;  %v1152_v16 = vsel %vm1088_vm13, %v1056_v61, %v1120_v1  ;;  %vm1838_vm13 = vcmask 1046534  }
 0x2da   : > { %v1057_v9 = vmul.f32 %v3926_v36, %v1021_v6  ;;  %v3283_v10 = vpop.f32.mrb[24].mxu0  ;;  %v1151_v11 = vsel %vm1087_vm12, %v1055_v62, %v1119_v5  ;;  %vm1836_vm12 = vcmask 1045509  }
 0x2db   : > { %v1122_v12 = vmul.f32 0.2, %v1058_v8  ;;  %v1024_v14 = vsub.f32 %v3283_v10, %v3915_v7  ;;  %v760_v15 = vpop.f32.mrb[25].mxu0  ;;  %3349 = vmatprep.mubr.msk.f32.mxu1 %vm980_vm6, %v1151_v11  ;;  %vm1090_vm15 = vcmp.gt.f32.partialorder %v1058_v8, 0.0 }
 0x2dc   : > { %v1121_v17 = vmul.f32 0.2, %v1057_v9  ;;  %v1023_v18 = vsub.f32 %v760_v15, %v3915_v7  ;;  %3350 = vmatmul.mubr.msk.f32.gmra.mrb[20].mxu1 %vm980_vm6, %v1152_v16  ;;  %vm1089_vm14 = vcmp.gt.f32.partialorder %v1057_v9, 0.0 }
 0x2dd   : > { %v1060_v19 = vmul.f32 %v3926_v36, %v1024_v14  ;;  %v1154_v25 = vsel %vm1090_vm15, %v1058_v8, %v1122_v12 }
 0x2de   : > { %v1059_v20 = vmul.f32 %v3926_v36, %v1023_v18  ;;  %v3286_v13 = vpop.f32.mrb[26].mxu0  ;;  %v1153_v21 = vsel %vm1089_vm14, %v1057_v9, %v1121_v17  ;;  %vm1840_vm14 = vcmask 1047559  }
 0x2df   : > { %v1124_v22 = vmul.f32 0.2, %v1060_v19  ;;  %v1026_v23 = vsub.f32 %v3286_v13, %v3915_v7  ;;  %v770_v24 = vpop.f32.mrb[27].mxu0  ;;  %3352 = vmatprep.mubr.msk.f32.mxu1 %vm980_vm6, %v1153_v21  ;;  %vm1092_vm1 = vcmp.gt.f32.partialorder %v1060_v19, 0.0 }
 0x2e0   : > { %v1123_v26 = vmul.f32 0.2, %v1059_v20  ;;  %v1025_v27 = vsub.f32 %v770_v24, %v3915_v7  ;;  %3353 = vmatmul.mubr.msk.f32.gmra.mrb[22].mxu1 %vm980_vm6, %v1154_v25  ;;  %vm1091_vm0 = vcmp.gt.f32.partialorder %v1059_v20, 0.0 }
 0x2e1   : > { %v1062_v28 = vmul.f32 %v3926_v36, %v1026_v23  ;;  %v1156_v35 = vsel %vm1092_vm1, %v1060_v19, %v1124_v22 }
 0x2e2   : > { %v1061_v29 = vmul.f32 %v3926_v36, %v1025_v27  ;;  %v3289_v30 = vpop.f32.mrb[28].mxu0  ;;  %v1155_v31 = vsel %vm1091_vm0, %v1059_v20, %v1123_v26 }
 0x2e3   : > { %v1126_v32 = vmul.f32 0.2, %v1062_v28  ;;  %v1028_v33 = vsub.f32 %v3289_v30, %v3915_v7  ;;  %v780_v34 = vpop.f32.mrb[29].mxu0  ;;  %3355 = vmatprep.mubr.msk.f32.mxu1 %vm980_vm6, %v1155_v31  ;;  %vm1094_vm3 = vcmp.gt.f32.partialorder %v1062_v28, 0.0 }
 0x2e4   : > { %v1125_v37 = vmul.f32 0.2, %v1061_v29  ;;  %v1027_v38 = vsub.f32 %v780_v34, %v3915_v7  ;;  %3356 = vmatmul.mubr.msk.f32.gmra.mrb[24].mxu1 %vm980_vm6, %v1156_v35  ;;  %vm1093_vm2 = vcmp.gt.f32.partialorder %v1061_v29, 0.0 }
 0x2e5   : > { %v1064_v39 = vmul.f32 %v3926_v36, %v1028_v33  ;;  %v1158_v46 = vsel %vm1094_vm3, %v1062_v28, %v1126_v32 }
 0x2e6   : > { %v1063_v40 = vmul.f32 %v3926_v36, %v1027_v38  ;;  %v3292_v41 = vpop.f32.mrb[30].mxu0  ;;  %v1157_v42 = vsel %vm1093_vm2, %v1061_v29, %v1125_v37 }
 0x2e7   : > { %v1128_v43 = vmul.f32 0.2, %v1064_v39  ;;  %v1030_v44 = vsub.f32 %v3292_v41, %v3915_v7  ;;  %v790_v45 = vpop.f32.mrb[31].mxu0  ;;  %3358 = vmatprep.mubr.msk.f32.mxu1 %vm980_vm6, %v1157_v42  ;;  %vm1096_vm5 = vcmp.gt.f32.partialorder %v1064_v39, 0.0 }
 0x2e8   : > { %v1127_v47 = vmul.f32 0.2, %v1063_v40  ;;  %v1029_v48 = vsub.f32 %v790_v45, %v3915_v7  ;;  %3359 = vmatmul.mubr.msk.f32.gmra.mrb[26].mxu1 %vm980_vm6, %v1158_v46  ;;  %vm1095_vm4 = vcmp.gt.f32.partialorder %v1063_v40, 0.0 }
 0x2e9   : > { %v1066_v49 = vmul.f32 %v3926_v36, %v1030_v44  ;;  %v1160_v53 = vsel %vm1096_vm5, %v1064_v39, %v1128_v43 }
 0x2ea   : > { %v1065_v50 = vmul.f32 %v3926_v36, %v1029_v48  ;;  %v1159_v51 = vsel %vm1095_vm4, %v1063_v40, %v1127_v47 }
 0x2eb   : > { %v1130_v52 = vmul.f32 0.2, %v1066_v49  ;;  %3361 = vmatprep.mubr.msk.f32.mxu1 %vm980_vm6, %v1159_v51  ;;  %vm1098_vm8 = vcmp.gt.f32.partialorder %v1066_v49, 0.0 }
 0x2ec   : > { %v1129_v54 = vmul.f32 0.2, %v1065_v50  ;;  %3362 = vmatmul.mubr.msk.f32.gmra.mrb[28].mxu1 %vm980_vm6, %v1160_v53  ;;  %vm1097_vm7 = vcmp.gt.f32.partialorder %v1065_v50, 0.0 }
 0x2ed   : > { %v1162_v7 = vsel %vm1098_vm8, %v1066_v49, %v1130_v52 }
 0x2ee   : > { %v1161_v55 = vsel %vm1097_vm7, %v1065_v50, %v1129_v54 }
 0x2ef   : > { %3364 = vmatprep.mubr.msk.f32.mxu1 %vm980_vm6, %v1161_v55 }
 0x2f0   : > { %3365 = vmatmul.mubr.msk.f32.gmra.mrb[30].mxu1 %vm980_vm6, %v1162_v7  ;;  %vm1830_vm6 = vcmask 1042434  }
 0x388   : > { %v3321_v56 = vpop.f32.mrb[32].mxu0 }
 0x389   : > { %v1534_v57 = vmul.f32 %v3321_v56, %v3321_v56  ;;  %v1610_v58 = vrot.slane %v3321_v56, 4  ;;  %v3327_v36 = vpop.f32.mrb[4].mxu1  ;;  %v1333_v59 = vpop.f32.mrb[33].mxu0 }
 0x38a   : > { %v1634_v60 = vrot.slane %v3327_v36, 4  ;;  %v1533_v61 = vmul.f32 %v1333_v59, %v1333_v59  ;;  %v1604_v62 = vrot.slane %v1333_v59, 4  ;;  %v1353_v63 = vpop.f32.mrb[5].mxu1  ;;  %v1493_v2 = vadd.f32 %v3321_v56, %v1333_v59 }
 0x38b   : > { %v1611_v0 = vmax.f32 %v3321_v56, %v1610_v58  ;;  %v1628_v1 = vrot.slane %v1353_v63, 4  ;;  %v1538_v3 = vmul.f32 %v3327_v36, %v3327_v36  ;;  %v1537_v10 = vmul.f32 %v1353_v63, %v1353_v63 }
 0x38c   : > { %v1635_v4 = vmax.f32 %v3327_v36, %v1634_v60  ;;  %v1605_v5 = vmax.f32 %v1333_v59, %v1604_v62  ;;  %v3324_v6 = vpop.f32.mrb[34].mxu0  ;;  %v1565_v8 = vadd.f32 %v1534_v57, %v1533_v61 }
 0x38d   : > { %v1612_v9 = vrot.slane %v1611_v0, 2  ;;  %v1629_v11 = vmax.f32 %v1353_v63, %v1628_v1  ;;  %v1622_v12 = vrot.slane %v3324_v6, 4  ;;  %v3330_v14 = vpop.f32.mrb[6].mxu1  ;;  %v1343_v15 = vpop.f32.mrb[35].mxu0  ;;  %v1536_v18 = vmul.f32 %v3324_v6, %v3324_v6 }
 0x38e   : > { %v1636_v16 = vrot.slane %v1635_v4, 2  ;;  %v1606_v17 = vrot.slane %v1605_v5, 2  ;;  %v1646_v19 = vrot.slane %v3330_v14, 4  ;;  %v1363_v20 = vpop.f32.mrb[7].mxu1  ;;  %v1494_v23 = vadd.f32 %v1493_v2, %v1343_v15 }
 0x38f   : > { %v1613_v13 = vmax.f32 %v1611_v0, %v1612_v9  ;;  %v1630_v21 = vrot.slane %v1629_v11, 2  ;;  %v1623_v22 = vmax.f32 %v3324_v6, %v1622_v12  ;;  %v1535_v27 = vmul.f32 %v1343_v15, %v1343_v15 }
 0x390   : > { %v1637_v24 = vmax.f32 %v1635_v4, %v1636_v16  ;;  %v1607_v25 = vmax.f32 %v1605_v5, %v1606_v17  ;;  %v1647_v26 = vmax.f32 %v3330_v14, %v1646_v19  ;;  %v1495_v31 = vadd.f32 %v3324_v6, %v1494_v23 }
 0x391   : > { %v1614_v28 = vrot.slane %v1613_v13, 1  ;;  %v1631_v29 = vmax.f32 %v1629_v11, %v1630_v21  ;;  %v1624_v30 = vrot.slane %v1623_v22, 2  ;;  %v3333_v32 = vpop.f32.mrb[8].mxu1  ;;  %v1566_v37 = vadd.f32 %v1565_v8, %v1535_v27 }
 0x392   : > { %v1638_v33 = vrot.slane %v1637_v24, 1  ;;  %v1608_v34 = vrot.slane %v1607_v25, 1  ;;  %v1648_v35 = vrot.slane %v1647_v26, 2  ;;  %v1373_v38 = vpop.f32.mrb[9].mxu1  ;;  %v1496_v42 = vadd.f32 %v1495_v31, %v1353_v63 }
 0x393   : > { %v1615_v39 = vmax.f32 %v1613_v13, %v1614_v28  ;;  %v1632_v40 = vrot.slane %v1631_v29, 1  ;;  %v1625_v41 = vmax.f32 %v1623_v22, %v1624_v30  ;;  %v1540_v44 = vmul.f32 %v3330_v14, %v3330_v14 }
 0x394   : > { %v1609_v43 = vmax.f32 %v1607_v25, %v1608_v34  ;;  %v1649_v45 = vmax.f32 %v1647_v26, %v1648_v35  ;;  %v1567_v46 = vadd.f32 %v1566_v37, %v1536_v18  ;;  %v4016_v47 = vmax.f32 %v1637_v24, %v1638_v33 }
 0x395   : > { %v1626_v48 = vrot.slane %v1625_v41, 1  ;;  %v1616_v49 = vrot.slane %v1343_v15, 4  ;;  %v1497_v50 = vadd.f32 %v3327_v36, %v1496_v42  ;;  %v4018_v51 = vpop.f32.mrb[10].mxu1  ;;  %v4020_v52 = vmax.f32 %v1631_v29, %v1632_v40 }
 0x396   : > { %v1650_v53 = vrot.slane %v1649_v45, 1  ;;  %v1568_v54 = vadd.f32 %v1567_v46, %v1537_v10  ;;  %v1829_v55 = vsel %vm1828_vm9, %v1615_v39, %v1609_v43  ;;  %v1383_v7 = vpop.f32.mrb[11].mxu1  ;;  %v1539_v58 = vmul.f32 %v1363_v20, %v1363_v20 }
 0x397   : > { %v1617_v56 = vmax.f32 %v1343_v15, %v1616_v49  ;;  %v1498_v57 = vadd.f32 %v1497_v50, %v1363_v20  ;;  %v1640_v59 = vrot.slane %v1363_v20, 4  ;;  %v1627_v60 = vmax.f32 %v1625_v41, %v1626_v48 }
 0x398   : > { %v4023_v61 = vmax.f32 %v1649_v45, %v1650_v53  ;;  %v1569_v36 = vadd.f32 %v1568_v54, %v1538_v3  ;;  %v1658_v62 = vrot.slane %v3333_v32, 4  ;;  %v1542_v1 = vmul.f32 %v3333_v32, %v3333_v32 }
 0x399   : > { %v1618_v63 = vrot.slane %v1617_v56, 2  ;;  %v1641_v0 = vmax.f32 %v1363_v20, %v1640_v59  ;;  %v1499_v2 = vadd.f32 %v3330_v14, %v1498_v57  ;;  %v1541_v6 = vmul.f32 %v1373_v38, %v1373_v38 }
 0x39a   : > { %v1570_v4 = vadd.f32 %v1569_v36, %v1539_v58  ;;  %v1659_v5 = vmax.f32 %v3333_v32, %v1658_v62  ;;  %v1652_v8 = vrot.slane %v1373_v38, 4  ;;  %v1670_v12 = vrot.slane %v4018_v51, 4 }
 0x39b   : > { %v1619_v9 = vmax.f32 %v1617_v56, %v1618_v63  ;;  %v1642_v10 = vrot.slane %v1641_v0, 2  ;;  %v1500_v11 = vadd.f32 %v1499_v2, %v1373_v38  ;;  %v3339_v15 = vpop.f32.mrb[12].mxu1  ;;  %v1543_v18 = vmul.f32 %v1383_v7, %v1383_v7 }
 0x39c   : > { %v1660_v16 = vrot.slane %v1659_v5, 2  ;;  %v1571_v3 = vadd.f32 %v1570_v4, %v1540_v44  ;;  %v1653_v17 = vmax.f32 %v1373_v38, %v1652_v8  ;;  %v1393_v19 = vpop.f32.mrb[13].mxu1  ;;  %v1671_v14 = vmax.f32 %v4018_v51, %v1670_v12 }
 0x39d   : > { %v1620_v20 = vrot.slane %v1619_v9, 1  ;;  %v1643_v13 = vmax.f32 %v1641_v0, %v1642_v10  ;;  %v1501_v21 = vadd.f32 %v3333_v32, %v1500_v11  ;;  %v1664_v25 = vrot.slane %v1383_v7, 4 }
 0x39e   : > { %v1661_v22 = vmax.f32 %v1659_v5, %v1660_v16  ;;  %v1572_v23 = vadd.f32 %v1571_v3, %v1541_v6  ;;  %v1654_v24 = vrot.slane %v1653_v17, 2  ;;  %v1672_v28 = vrot.slane %v1671_v14, 2 }
 0x39f   : > { %v1621_v26 = vmax.f32 %v1619_v9, %v1620_v20  ;;  %v1644_v27 = vrot.slane %v1643_v13, 1  ;;  %v1502_v29 = vadd.f32 %v1501_v21, %v1383_v7  ;;  %v1665_v34 = vmax.f32 %v1383_v7, %v1664_v25 }
 0x3a0   : > { %v1662_v30 = vrot.slane %v1661_v22, 1  ;;  %v1655_v31 = vmax.f32 %v1653_v17, %v1654_v24  ;;  %v1573_v33 = vadd.f32 %v1572_v23, %v1542_v1  ;;  %v1544_v38 = vmul.f32 %v4018_v51, %v4018_v51 }
 0x3a1   : > { %v1831_v35 = vsel %vm1830_vm6, %v1621_v26, %v1829_v55  ;;  %v1645_v37 = vmax.f32 %v1643_v13, %v1644_v27  ;;  %v1673_v32 = vmax.f32 %v1671_v14, %v1672_v28  ;;  %v1666_v45 = vrot.slane %v1665_v34, 2 }
 0x3a2   : > { %v1833_v39 = vsel %vm1832_vm10, %v1627_v60, %v1831_v35  ;;  %v1663_v40 = vmax.f32 %v1661_v22, %v1662_v30  ;;  %v1656_v41 = vrot.slane %v1655_v31, 1  ;;  %v1574_v42 = vadd.f32 %v1573_v33, %v1543_v18 }
 0x3a3   : > { %v1835_v43 = vsel %vm1834_vm11, %v4020_v52, %v1833_v39  ;;  %v1674_v44 = vrot.slane %v1673_v32, 1  ;;  %v1682_v46 = vrot.slane %v3339_v15, 4  ;;  %v3342_v48 = vpop.f32.mrb[14].mxu1  ;;  %v1546_v53 = vmul.f32 %v3339_v15, %v3339_v15 }
 0x3a4   : > { %v1837_v49 = vsel %vm1836_vm12, %v4016_v47, %v1835_v43  ;;  %v1657_v50 = vmax.f32 %v1655_v31, %v1656_v41  ;;  %v1503_v54 = vadd.f32 %v4018_v51, %v1502_v29  ;;  %v1403_v55 = vpop.f32.mrb[15].mxu1  ;;  %v1667_v56 = vmax.f32 %v1665_v34, %v1666_v45 }
 0x3a5   : > { %v1839_v7 = vsel %vm1838_vm13, %v1645_v37, %v1837_v49  ;;  %v1683_v57 = vmax.f32 %v3339_v15, %v1682_v46  ;;  %v1545_v58 = vmul.f32 %v1393_v19, %v1393_v19  ;;  %v1575_v36 = vadd.f32 %v1574_v42, %v1544_v38 }
 0x3a6   : > { %v1841_v52 = vsel %vm1840_vm14, %v4023_v61, %v1839_v7  ;;  %v1842_v59 = vsel %vm1828_vm9, %v1663_v40, %v1657_v50  ;;  %v1504_v60 = vadd.f32 %v1503_v54, %v1393_v19  ;;  %v1675_v47 = vmax.f32 %v1673_v32, %v1674_v44 }
 0x3a7   : > { %1869 = vst [vmem:[%s4041_s15] sm:$0xff] %v1841_v52  ;;  %v1668_v62 = vrot.slane %v1667_v56, 1  ;;  %v1684_v51 = vrot.slane %v1683_v57, 2  ;;  %v1676_v63 = vrot.slane %v1393_v19, 4  ;;  %v3345_v0 = vpop.f32.mrb[16].mxu1  ;;  %v1576_v1 = vadd.f32 %v1575_v36, %v1545_v58 }
 0x3a8   : > { %v1694_v2 = vrot.slane %v3342_v48, 4  ;;  %v1505_v4 = vadd.f32 %v3339_v15, %v1504_v60  ;;  %v1547_v5 = vmul.f32 %v1403_v55, %v1403_v55  ;;  %v1413_v6 = vpop.f32.mrb[17].mxu1  ;;  %v1688_v10 = vrot.slane %v1403_v55, 4 }
 0x3a9   : > { %v1669_v8 = vmax.f32 %v1667_v56, %v1668_v62  ;;  %v1685_v61 = vmax.f32 %v1683_v57, %v1684_v51  ;;  %v1677_v9 = vmax.f32 %v1393_v19, %v1676_v63  ;;  %v1548_v11 = vmul.f32 %v3342_v48, %v3342_v48 }
 0x3aa   : > { %v1695_v12 = vmax.f32 %v3342_v48, %v1694_v2  ;;  %v1506_v16 = vadd.f32 %v1505_v4, %v1403_v55  ;;  %v1577_v3 = vadd.f32 %v1576_v1, %v1546_v53  ;;  %v1689_v13 = vmax.f32 %v1403_v55, %v1688_v10 }
 0x3ab   : > { %v1843_v17 = vsel %vm1830_vm6, %v1669_v8, %v1842_v59  ;;  %v1686_v18 = vrot.slane %v1685_v61, 1  ;;  %v1678_v20 = vrot.slane %v1677_v9, 2  ;;  %v3348_v14 = vpop.f32.mrb[18].mxu1  ;;  %v1706_v23 = vrot.slane %v3345_v0, 4 }
 0x3ac   : > { %v1844_v21 = vsel %vm1832_vm10, %v1675_v47, %v1843_v17  ;;  %v1696_v22 = vrot.slane %v1695_v12, 2  ;;  %v1578_v15 = vadd.f32 %v1577_v3, %v1547_v5  ;;  %v1423_v24 = vpop.f32.mrb[19].mxu1  ;;  %v1690_v26 = vrot.slane %v1689_v13, 2 }
 0x3ad   : > { %v1679_v25 = vmax.f32 %v1677_v9, %v1678_v20  ;;  %v1550_v19 = vmul.f32 %v3345_v0, %v3345_v0  ;;  %v1507_v27 = vadd.f32 %v3342_v48, %v1506_v16  ;;  %v1707_v29 = vmax.f32 %v3345_v0, %v1706_v23 }
 0x3ae   : > { %v1697_v28 = vmax.f32 %v1695_v12, %v1696_v22  ;;  %v1549_v30 = vmul.f32 %v1413_v6, %v1413_v6  ;;  %v1579_v31 = vadd.f32 %v1578_v15, %v1548_v11  ;;  %v1691_v34 = vmax.f32 %v1689_v13, %v1690_v26 }
 0x3af   : > { %v1680_v33 = vrot.slane %v1679_v25, 1  ;;  %v1508_v35 = vadd.f32 %v1507_v27, %v1413_v6  ;;  %v1700_v37 = vrot.slane %v1413_v6, 4  ;;  %v3351_v38 = vpop.f32.mrb[20].mxu1  ;;  %v1687_v32 = vmax.f32 %v1685_v61, %v1686_v18 }
 0x3b0   : > { %v1698_v39 = vrot.slane %v1697_v28, 1  ;;  %v1708_v40 = vrot.slane %v1707_v29, 2  ;;  %v1580_v41 = vadd.f32 %v1579_v31, %v1549_v30  ;;  %v1433_v42 = vpop.f32.mrb[21].mxu1  ;;  %v1692_v44 = vrot.slane %v1691_v34, 1 }
 0x3b1   : > { %v1681_v43 = vmax.f32 %v1679_v25, %v1680_v33  ;;  %v1701_v45 = vmax.f32 %v1413_v6, %v1700_v37  ;;  %v1718_v46 = vrot.slane %v3348_v14, 4  ;;  %v1509_v50 = vadd.f32 %v3345_v0, %v1508_v35 }
 0x3b2   : > { %v1699_v49 = vmax.f32 %v1697_v28, %v1698_v39  ;;  %v1709_v48 = vmax.f32 %v1707_v29, %v1708_v40  ;;  %v1551_v53 = vmul.f32 %v1423_v24, %v1423_v24  ;;  %v1693_v55 = vmax.f32 %v1691_v34, %v1692_v44 }
 0x3b3   : > { %v1845_v54 = vsel %vm1834_vm11, %v1681_v43, %v1844_v21  ;;  %v1702_v7 = vrot.slane %v1701_v45, 2  ;;  %v1719_v56 = vmax.f32 %v3348_v14, %v1718_v46  ;;  %v3354_v57 = vpop.f32.mrb[22].mxu1  ;;  %v1510_v59 = vadd.f32 %v1509_v50, %v1423_v24 }
 0x3b4   : > { %v1846_v58 = vsel %vm1836_vm12, %v1687_v32, %v1845_v54  ;;  %v1710_v52 = vrot.slane %v1709_v48, 1  ;;  %v1581_v60 = vadd.f32 %v1580_v41, %v1550_v19  ;;  %v1443_v36 = vpop.f32.mrb[23].mxu1  ;;  %v1712_v63 = vrot.slane %v1423_v24, 4 }
 0x3b5   : > { %v1847_v47 = vsel %vm1838_vm13, %v1693_v55, %v1846_v58  ;;  %v1703_v62 = vmax.f32 %v1701_v45, %v1702_v7  ;;  %v1720_v51 = vrot.slane %v1719_v56, 2  ;;  %v1552_v2 = vmul.f32 %v3348_v14, %v3348_v14 }
 0x3b6   : > { %v1848_v0 = vsel %vm1840_vm14, %v1699_v49, %v1847_v47  ;;  %v1711_v1 = vmax.f32 %v1709_v48, %v1710_v52  ;;  %v1582_v4 = vadd.f32 %v1581_v60, %v1551_v53  ;;  %v1713_v8 = vmax.f32 %v1423_v24, %v1712_v63 }
 0x3b7   : > { %1870 = vst [vmem:[%s4041_s15 + $0x8] sm:$0xff] %v1848_v0  ;;  %v1704_v5 = vrot.slane %v1703_v62, 1  ;;  %v1721_v6 = vmax.f32 %v1719_v56, %v1720_v51  ;;  %v1730_v61 = vrot.slane %v3351_v38, 4  ;;  %v4051_v9 = vpop.f32.mrb[24].mxu1  ;;  %v1511_v10 = vadd.f32 %v3348_v14, %v1510_v59 }
 0x3b8   : > { %v1553_v11 = vmul.f32 %v1433_v42, %v1433_v42  ;;  %v1583_v12 = vadd.f32 %v1582_v4, %v1552_v2  ;;  %v1724_v16 = vrot.slane %v1433_v42, 4  ;;  %v1453_v3 = vpop.f32.mrb[25].mxu1  ;;  %v1714_v18 = vrot.slane %v1713_v8, 2 }
 0x3b9   : > { %v1705_v17 = vmax.f32 %v1703_v62, %v1704_v5  ;;  %v1554_v20 = vmul.f32 %v3351_v38, %v3351_v38  ;;  %v1731_v13 = vmax.f32 %v3351_v38, %v1730_v61  ;;  %v1722_v21 = vrot.slane %v1721_v6, 1 }
 0x3ba   : > { %v1512_v22 = vadd.f32 %v1511_v10, %v1433_v42  ;;  %v1584_v15 = vadd.f32 %v1583_v12, %v1553_v11  ;;  %v1725_v23 = vmax.f32 %v1433_v42, %v1724_v16  ;;  %v1715_v26 = vmax.f32 %v1713_v8, %v1714_v18 }
 0x3bb   : > { %v1849_v25 = vsel %vm1828_vm9, %v1711_v1, %v1705_v17  ;;  %v1732_v24 = vrot.slane %v1731_v13, 2  ;;  %v1556_v19 = vmul.f32 %v3354_v57, %v3354_v57  ;;  %v4054_v27 = vpop.f32.mrb[26].mxu1  ;;  %v1742_v28 = vrot.slane %v3354_v57, 4 }
 0x3bc   : > { %v1726_v14 = vrot.slane %v1725_v23, 2  ;;  %v1513_v29 = vadd.f32 %v3351_v38, %v1512_v22  ;;  %v1555_v30 = vmul.f32 %v1443_v36, %v1443_v36  ;;  %v1463_v31 = vpop.f32.mrb[27].mxu1  ;;  %v1716_v33 = vrot.slane %v1715_v26, 1 }
 0x3bd   : > { %v1733_v34 = vmax.f32 %v1731_v13, %v1732_v24  ;;  %v1585_v35 = vadd.f32 %v1584_v15, %v1554_v20  ;;  %v1736_v37 = vrot.slane %v1443_v36, 4  ;;  %v1723_v32 = vmax.f32 %v1721_v6, %v1722_v21 }
 0x3be   : > { %v1727_v39 = vmax.f32 %v1725_v23, %v1726_v14  ;;  %v1743_v40 = vmax.f32 %v3354_v57, %v1742_v28  ;;  %v1514_v41 = vadd.f32 %v1513_v29, %v1443_v36  ;;  %v1717_v42 = vmax.f32 %v1715_v26, %v1716_v33 }
 0x3bf   : > { %v1734_v43 = vrot.slane %v1733_v34, 1  ;;  %v1586_v44 = vadd.f32 %v1585_v35, %v1555_v30  ;;  %v1737_v45 = vmax.f32 %v1443_v36, %v1736_v37  ;;  %v4056_v46 = vpop.f32.mrb[28].mxu1  ;;  %v1754_v38 = vrot.slane %v4051_v9, 4 }
 0x3c0   : > { %v1728_v49 = vrot.slane %v1727_v39, 1  ;;  %v1744_v48 = vrot.slane %v1743_v40, 2  ;;  %v1515_v50 = vadd.f32 %v3354_v57, %v1514_v41  ;;  %v1473_v53 = vpop.f32.mrb[29].mxu1  ;;  %v1850_v54 = vsel %vm1830_vm6, %v1717_v42, %v1849_v25 }
 0x3c1   : > { %v1735_v55 = vmax.f32 %v1733_v34, %v1734_v43  ;;  %v1738_v7 = vrot.slane %v1737_v45, 2  ;;  %v1557_v56 = vmul.f32 %v1453_v3, %v1453_v3  ;;  %v1851_v52 = vsel %vm1832_vm10, %v1723_v32, %v1850_v54 }
 0x3c2   : > { %v1729_v58 = vmax.f32 %v1727_v39, %v1728_v49  ;;  %v1745_v59 = vmax.f32 %v1743_v40, %v1744_v48  ;;  %v1755_v60 = vmax.f32 %v4051_v9, %v1754_v38  ;;  %v1516_v47 = vadd.f32 %v1515_v50, %v1453_v3 }
 0x3c3   : > { %v1739_v36 = vmax.f32 %v1737_v45, %v1738_v7  ;;  %v1587_v62 = vadd.f32 %v1586_v44, %v1556_v19  ;;  %v1748_v51 = vrot.slane %v1453_v3, 4  ;;  %v4062_v63 = vpop.f32.mrb[30].mxu1  ;;  %v1558_v1 = vmul.f32 %v4051_v9, %v4051_v9 }
 0x3c4   : > { %v1852_v57 = vsel %vm1834_vm11, %v1729_v58, %v1851_v52  ;;  %v1746_v0 = vrot.slane %v1745_v59, 1  ;;  %v1756_v2 = vrot.slane %v1755_v60, 2  ;;  %v4067_v4 = vpop.f32.mrb[31].mxu1  ;;  %v1766_v12 = vrot.slane %v4054_v27, 4 }
 0x3c5   : > { %v1740_v5 = vrot.slane %v1739_v36, 1  ;;  %v1853_v6 = vsel %vm1836_vm12, %v1735_v55, %v1852_v57  ;;  %v1588_v8 = vadd.f32 %v1587_v62, %v1557_v56  ;;  %v1749_v61 = vmax.f32 %v1453_v3, %v1748_v51 }
 0x3c6   : > { %v1747_v10 = vmax.f32 %v1745_v59, %v1746_v0  ;;  %v1757_v11 = vmax.f32 %v1755_v60, %v1756_v2  ;;  %v1517_v16 = vadd.f32 %v4051_v9, %v1516_v47  ;;  %v1559_v20 = vmul.f32 %v1463_v31, %v1463_v31 }
 0x3c7   : > { %v1741_v17 = vmax.f32 %v1739_v36, %v1740_v5  ;;  %v1750_v18 = vrot.slane %v1749_v61, 2  ;;  %v1589_v13 = vadd.f32 %v1588_v8, %v1558_v1  ;;  %v1767_v22 = vmax.f32 %v4054_v27, %v1766_v12 }
 0x3c8   : > { %v1758_v21 = vrot.slane %v1757_v11, 1  ;;  %v1518_v15 = vadd.f32 %v1517_v16, %v1463_v31  ;;  %v1760_v23 = vrot.slane %v1463_v31, 4  ;;  %v1560_v3 = vmul.f32 %v4054_v27, %v4054_v27 }
 0x3c9   : > { %v1854_v25 = vsel %vm1838_vm13, %v1741_v17, %v1853_v6  ;;  %v1751_v26 = vmax.f32 %v1749_v61, %v1750_v18  ;;  %v1590_v24 = vadd.f32 %v1589_v13, %v1559_v20  ;;  %v1768_v14 = vrot.slane %v1767_v22, 2 }
 0x3ca   : > { %v1855_v19 = vsel %vm1840_vm14, %v1747_v10, %v1854_v25  ;;  %v1759_v9 = vmax.f32 %v1757_v11, %v1758_v21  ;;  %v1761_v28 = vmax.f32 %v1463_v31, %v1760_v23  ;;  %v1778_v30 = vrot.slane %v4056_v46, 4 }
 0x3cb   : > { %1871 = vst [vmem:[%s4041_s15 + $0x10] sm:$0xff] %v1855_v19  ;;  %v1752_v29 = vrot.slane %v1751_v26, 1  ;;  %v1519_v33 = vadd.f32 %v4054_v27, %v1518_v15  ;;  %v1561_v34 = vmul.f32 %v1473_v53, %v1473_v53  ;;  %v1769_v35 = vmax.f32 %v1767_v22, %v1768_v14  ;;  %v1492_v19 = vld [vmem:[#allocation4] sm:$0x1] }
 0x3cc   : > { %v1762_v37 = vrot.slane %v1761_v28, 2  ;;  %v1591_v32 = vadd.f32 %v1590_v24, %v1560_v3  ;;  %v1772_v39 = vrot.slane %v1473_v53, 4  ;;  %v1562_v41 = vmul.f32 %v4056_v46, %v4056_v46 }
 0x3cd   : > { %v1753_v40 = vmax.f32 %v1751_v26, %v1752_v29  ;;  %v1779_v42 = vmax.f32 %v4056_v46, %v1778_v30  ;;  %v1520_v43 = vadd.f32 %v1519_v33, %v1473_v53  ;;  %v1770_v44 = vrot.slane %v1769_v35, 1 }
 0x3ce   : > { %v1763_v31 = vmax.f32 %v1761_v28, %v1762_v37  ;;  %v1592_v45 = vadd.f32 %v1591_v32, %v1561_v34  ;;  %v1773_v49 = vmax.f32 %v1473_v53, %v1772_v39  ;;  %v1790_v27 = vrot.slane %v4062_v63, 4  ;;  %v1532_v34 = vld [vmem:[#allocation5] sm:$0x1] }
 0x3cf   : > { %v1856_v48 = vsel %vm1828_vm9, %v1759_v9, %v1753_v40  ;;  %v1780_v38 = vrot.slane %v1779_v42, 2  ;;  %v1521_v50 = vadd.f32 %v4056_v46, %v1520_v43  ;;  %v1563_v7 = vmul.f32 %v4067_v4, %v4067_v4 }
 0x3d0   : > { %v1764_v54 = vrot.slane %v1763_v31, 1  ;;  %v1774_v55 = vrot.slane %v1773_v49, 2  ;;  %v1791_v58 = vmax.f32 %v4062_v63, %v1790_v27  ;;  %v1593_v59 = vadd.f32 %v1592_v45, %v1562_v41 }
 0x3d1   : > { %v1781_v56 = vmax.f32 %v1779_v42, %v1780_v38  ;;  %v1522_v52 = vadd.f32 %v1521_v50, %v4067_v4  ;;  %v1771_v60 = vmax.f32 %v1769_v35, %v1770_v44  ;;  %v1784_v47 = vrot.slane %v4067_v4, 4 }
 0x3d2   : > { %v1765_v53 = vmax.f32 %v1763_v31, %v1764_v54  ;;  %v1775_v36 = vmax.f32 %v1773_v49, %v1774_v55  ;;  %v1792_v51 = vrot.slane %v1791_v58, 2  ;;  %v1594_v57 = vadd.f32 %v1593_v59, %v1563_v7 }
 0x3d3   : > { %v1782_v62 = vrot.slane %v1781_v56, 1  ;;  %v1523_v46 = vadd.f32 %v4062_v63, %v1522_v52  ;;  %v1564_v2 = vmul.f32 %v4062_v63, %v4062_v63  ;;  %v1785_v5 = vmax.f32 %v4067_v4, %v1784_v47 }
 0x3d4   : > { %v1857_v0 = vsel %vm1830_vm6, %v1765_v53, %v1856_v48  ;;  %v1776_v1 = vrot.slane %v1775_v36, 1  ;;  %v1793_v8 = vmax.f32 %v1791_v58, %v1792_v51 }
 0x3d5   : > { %v1858_v6 = vsel %vm1832_vm10, %v1771_v60, %v1857_v0  ;;  %v1524_v61 = vrot.slane %v1523_v46, 4  ;;  %v1595_v11 = vadd.f32 %v1594_v57, %v1564_v2  ;;  %v1786_v12 = vrot.slane %v1785_v5, 2 }
 0x3d6   : > { %v1777_v10 = vmax.f32 %v1775_v36, %v1776_v1  ;;  %v1783_v16 = vmax.f32 %v1781_v56, %v1782_v62  ;;  %v1794_v21 = vrot.slane %v1793_v8, 1 }
 0x3d7   : > { %v1525_v17 = vadd.f32 %v1524_v61, %v1523_v46  ;;  %v1596_v20 = vrot.slane %v1595_v11, 4  ;;  %v1787_v13 = vmax.f32 %v1785_v5, %v1786_v12 }
 0x3d8   : > { %v1859_v18 = vsel %vm1834_vm11, %v1777_v10, %v1858_v6  ;;  %v1795_v3 = vmax.f32 %v1793_v8, %v1794_v21 }
 0x3d9   : > { %v1526_v22 = vrot.slane %v1525_v17, 2  ;;  %v1860_v63 = vsel %vm1836_vm12, %v1783_v16, %v1859_v18  ;;  %v1597_v15 = vadd.f32 %v1596_v20, %v1595_v11  ;;  %v1788_v4 = vrot.slane %v1787_v13, 1 }
 0x3db   : > { %v1527_v23 = vadd.f32 %v1526_v22, %v1525_v17  ;;  %v1598_v25 = vrot.slane %v1597_v15, 2  ;;  %v1789_v26 = vmax.f32 %v1787_v13, %v1788_v4 }
 0x3dd   : > { %v1528_v24 = vrot.slane %v1527_v23, 1  ;;  %v1599_v9 = vadd.f32 %v1598_v25, %v1597_v15  ;;  %v1861_v14 = vsel %vm1838_vm13, %v1789_v26, %v1860_v63 }
 0x3de   : > { %v1862_v29 = vsel %vm1840_vm14, %v1795_v3, %v1861_v14 }
 0x3df   : > { %v1529_v28 = vadd.f32 %v1528_v24, %v1527_v23  ;;  %v1600_v30 = vrot.slane %v1599_v9, 1  ;;  %1872 = vst [vmem:[%s4041_s15 + $0x18] sm:$0xff] %v1862_v29 }
 0x3e1   : > { %v1530_v33 = vadd.f32 %v1529_v28, %v1492_v19  ;;  %v1601_v35 = vadd.f32 %v1600_v30, %v1599_v9 }
 0x3e3   : > { %1531 = vst [vmem:[#allocation4] sm:$0x1] %v1530_v33  ;;  %v1602_v37 = vadd.f32 %v1601_v35, %v1532_v34 }
 0x3e5   : > { %1603 = vst [vmem:[#allocation5] sm:$0x1] %v1602_v37 }
 0x3e6 PF: > { %p3160_p0 = scmp.ne.s32.totalorder %s3687_s22, 2 }
 0x3e8   : > { %1876 = sbr.rel (%p3160_p0) target bundleno = 1367 (0x557), region = 60 }
 0x3ef   : > { %1880 = sbr.rel (!%p306_p8) target bundleno = 1014 (0x3f6), region = 64  ;;  %v3710_v32 = vmov (%p306_p8), 0.0  }
 0x3f0   : > { %1881 = vst [vmem:[%s4338_s5] sm:$0xff] (%p306_p8), %v3710_v32  ;;  %1882 = vst [vmem:[%s4339_s6] sm:$0xff] (%p306_p8), %v3710_v32 }
 0x3f6 PF: > { %v1934_v39 = vld [vmem:[#allocation10 + $0x8] sm:$0xff]  ;;  %v1936_v41 = vld [vmem:[#allocation10 + $0x18] sm:$0xff]  ;;  %v1933_v44 = vld [vmem:[#allocation10] sm:$0xff]  ;;  %v3711_v45 = vmov 0.0   ;;  %s3162_s22 = sshll.u32 %s3683_s21, 5 }
 0x3f7   : > { %v1942_v40 = vld [vmem:[#allocation10 + $0x48] sm:$0xff]  ;;  %v1944_v43 = vld [vmem:[#allocation10 + $0x58] sm:$0xff]  ;;  %v1941_v31 = vld [vmem:[#allocation10 + $0x40] sm:$0xff]  ;;  %2125 = vmatprep.mubr.f32.mxu0 %v3711_v45  ;;  %2214 = vmatprep.mubr.f32.mxu1 %v3711_v45  ;;  %s1896_s19 = scalar_lea.vmem [#allocation6], %s3162_s22 }
 0x3f8   : > { %v3383_v42 = vpack.c.bf16 %v1942_v40, %v1934_v39  ;;  %v3415_v49 = vpack.c.bf16 %v1944_v43, %v1936_v41  ;;  %v3385_v48 = vpack.c.bf16 %v1941_v31, %v1933_v44  ;;  %v1935_v38 = vld [vmem:[#allocation10 + $0x10] sm:$0xff]  ;;  %v1950_v50 = vld [vmem:[#allocation10 + $0x88] sm:$0xff]  ;;  %v1952_v7 = vld [vmem:[#allocation10 + $0x98] sm:$0xff] }
 0x3f9   : > { %v1943_v27 = vld [vmem:[#allocation10 + $0x50] sm:$0xff]  ;;  %v1958_v55 = vld [vmem:[#allocation10 + $0xc8] sm:$0xff]  ;;  %v1960_v56 = vld [vmem:[#allocation10 + $0xd8] sm:$0xff] }
 0x3fa   : > { %3384 = vmatprep.subr.bf16.mxu0 %v3383_v42  ;;  %v3417_v54 = vpack.c.bf16 %v1943_v27, %v1935_v38  ;;  %3416 = vmatprep.subr.bf16.mxu1 %v3415_v49  ;;  %v3387_v58 = vpack.c.bf16 %v1958_v55, %v1950_v50  ;;  %v3419_v52 = vpack.c.bf16 %v1960_v56, %v1952_v7  ;;  %v1949_v59 = vld [vmem:[#allocation10 + $0x80] sm:$0xff]  ;;  %v1951_v53 = vld [vmem:[#allocation10 + $0x90] sm:$0xff]  ;;  %v1966_v62 = vld [vmem:[#allocation10 + $0x108] sm:$0xff] }
 0x3fb   : > { %3386 = vmatpush1.bf16.msra.mxu0 %v3385_v48  ;;  %v1957_v60 = vld [vmem:[#allocation10 + $0xc0] sm:$0xff]  ;;  %v1959_v47 = vld [vmem:[#allocation10 + $0xd0] sm:$0xff]  ;;  %v1974_v51 = vld [vmem:[#allocation10 + $0x148] sm:$0xff] }
 0x3fc   : > { %3418 = vmatpush1.bf16.msra.mxu1 %v3417_v54  ;;  %v3389_v36 = vpack.c.bf16 %v1957_v60, %v1949_v59  ;;  %3388 = vmatprep.subr.bf16.mxu0 %v3387_v58  ;;  %v3421_v46 = vpack.c.bf16 %v1959_v47, %v1951_v53  ;;  %v3391_v57 = vpack.c.bf16 %v1974_v51, %v1966_v62  ;;  %v1968_v0 = vld [vmem:[#allocation10 + $0x118] sm:$0xff]  ;;  %v1965_v2 = vld [vmem:[#allocation10 + $0x100] sm:$0xff]  ;;  %v1967_v8 = vld [vmem:[#allocation10 + $0x110] sm:$0xff] }
 0x3fd   : > { %3420 = vmatprep.subr.bf16.mxu1 %v3419_v52  ;;  %v1976_v1 = vld [vmem:[#allocation10 + $0x158] sm:$0xff]  ;;  %v1973_v6 = vld [vmem:[#allocation10 + $0x140] sm:$0xff]  ;;  %v1975_v61 = vld [vmem:[#allocation10 + $0x150] sm:$0xff] }
 0x3fe   : > { %v3423_v5 = vpack.c.bf16 %v1976_v1, %v1968_v0  ;;  %v3393_v10 = vpack.c.bf16 %v1973_v6, %v1965_v2  ;;  %v1982_v11 = vld [vmem:[#allocation10 + $0x188] sm:$0xff]  ;;  %v1984_v16 = vld [vmem:[#allocation10 + $0x198] sm:$0xff]  ;;  %v3425_v17 = vpack.c.bf16 %v1975_v61, %v1967_v8  ;;  %v1981_v13 = vld [vmem:[#allocation10 + $0x180] sm:$0xff]  ;;  %v1902_v0 = vlaneseq }
 0x3ff   : > { %3390 = vmatpush1.bf16.msra.mxu0 %v3389_v36  ;;  %v1990_v12 = vld [vmem:[#allocation10 + $0x1c8] sm:$0xff]  ;;  %v1992_v20 = vld [vmem:[#allocation10 + $0x1d8] sm:$0xff]  ;;  %v1989_v21 = vld [vmem:[#allocation10 + $0x1c0] sm:$0xff] }
 0x400   : > { %3422 = vmatpush1.bf16.msra.mxu1 %v3421_v46  ;;  %3392 = vmatprep.subr.bf16.mxu0 %v3391_v57  ;;  %v3395_v18 = vpack.c.bf16 %v1990_v12, %v1982_v11  ;;  %v3427_v22 = vpack.c.bf16 %v1992_v20, %v1984_v16  ;;  %v1983_v63 = vld [vmem:[#allocation10 + $0x190] sm:$0xff]  ;;  %v1998_v4 = vld [vmem:[#allocation10 + $0x208] sm:$0xff]  ;;  %v2000_v25 = vld [vmem:[#allocation10 + $0x218] sm:$0xff]  ;;  %v3397_v3 = vpack.c.bf16 %v1989_v21, %v1981_v13  ;;  %v4113_v20 = vshrl.u32 %v1902_v0, 7 }
 0x401   : > { %3424 = vmatprep.subr.bf16.mxu1 %v3423_v5  ;;  %v1991_v15 = vld [vmem:[#allocation10 + $0x1d0] sm:$0xff]  ;;  %v2006_v23 = vld [vmem:[#allocation10 + $0x248] sm:$0xff]  ;;  %v2008_v26 = vld [vmem:[#allocation10 + $0x258] sm:$0xff] }
 0x402   : > { %v3429_v24 = vpack.c.bf16 %v1991_v15, %v1983_v63  ;;  %v3399_v19 = vpack.c.bf16 %v2006_v23, %v1998_v4  ;;  %v1997_v9 = vld [vmem:[#allocation10 + $0x200] sm:$0xff]  ;;  %v1999_v28 = vld [vmem:[#allocation10 + $0x210] sm:$0xff]  ;;  %v3431_v29 = vpack.c.bf16 %v2008_v26, %v2000_v25  ;;  %v2014_v33 = vld [vmem:[#allocation10 + $0x288] sm:$0xff]  ;;  %v4117_v25 = vsub.s32 0, %v4113_v20 }
 0x403   : > { %3394 = vmatpush1.bf16.msra.mxu0 %v3393_v10  ;;  %v2005_v14 = vld [vmem:[#allocation10 + $0x240] sm:$0xff]  ;;  %v2007_v30 = vld [vmem:[#allocation10 + $0x250] sm:$0xff]  ;;  %v2022_v34 = vld [vmem:[#allocation10 + $0x2c8] sm:$0xff] }
 0x404   : > { %3426 = vmatpush1.bf16.msra.mxu1 %v3425_v17  ;;  %3396 = vmatprep.subr.bf16.mxu0 %v3395_v18  ;;  %v2016_v35 = vld [vmem:[#allocation10 + $0x298] sm:$0xff]  ;;  %v3401_v32 = vpack.c.bf16 %v2005_v14, %v1997_v9  ;;  %v3433_v39 = vpack.c.bf16 %v2007_v30, %v1999_v28  ;;  %v3403_v40 = vpack.c.bf16 %v2022_v34, %v2014_v33  ;;  %v2013_v41 = vld [vmem:[#allocation10 + $0x280] sm:$0xff]  ;;  %v2015_v43 = vld [vmem:[#allocation10 + $0x290] sm:$0xff] }
 0x405   : > { %3428 = vmatprep.subr.bf16.mxu1 %v3427_v22  ;;  %v2024_v37 = vld [vmem:[#allocation10 + $0x2d8] sm:$0xff]  ;;  %v2021_v42 = vld [vmem:[#allocation10 + $0x2c0] sm:$0xff]  ;;  %v2023_v31 = vld [vmem:[#allocation10 + $0x2d0] sm:$0xff] }
 0x406   : > { %v3435_v44 = vpack.c.bf16 %v2024_v37, %v2016_v35  ;;  %v2030_v49 = vld [vmem:[#allocation10 + $0x308] sm:$0xff]  ;;  %v2032_v38 = vld [vmem:[#allocation10 + $0x318] sm:$0xff]  ;;  %v3405_v50 = vpack.c.bf16 %v2021_v42, %v2013_v41  ;;  %v2029_v54 = vld [vmem:[#allocation10 + $0x300] sm:$0xff]  ;;  %v3437_v7 = vpack.c.bf16 %v2023_v31, %v2015_v43 }
 0x407   : > { %3398 = vmatpush1.bf16.msra.mxu0 %v3397_v3  ;;  %v2038_v48 = vld [vmem:[#allocation10 + $0x348] sm:$0xff]  ;;  %v2040_v27 = vld [vmem:[#allocation10 + $0x358] sm:$0xff]  ;;  %v2037_v55 = vld [vmem:[#allocation10 + $0x340] sm:$0xff] }
 0x408   : > { %3430 = vmatpush1.bf16.msra.mxu1 %v3429_v24  ;;  %3400 = vmatprep.subr.bf16.mxu0 %v3399_v19  ;;  %v3407_v56 = vpack.c.bf16 %v2038_v48, %v2030_v49  ;;  %v2031_v58 = vld [vmem:[#allocation10 + $0x310] sm:$0xff]  ;;  %v1887_v52 = vld [vmem:[#allocation4] sm:$0x1]  ;;  %v1888_v59 = vld [vmem:[#allocation5] sm:$0x1]  ;;  %v3439_v60 = vpack.c.bf16 %v2040_v27, %v2032_v38  ;;  %v3409_v1 = vpack.c.bf16 %v2037_v55, %v2029_v54 }
 0x409   : > { %3432 = vmatprep.subr.bf16.mxu1 %v3431_v29  ;;  %v2039_v53 = vld [vmem:[#allocation10 + $0x350] sm:$0xff]  ;;  %v2046_v36 = vld [vmem:[#allocation10 + $0x388] sm:$0xff]  ;;  %v1889_v62 = vmul.f32 0.001953125, %v1887_v52  ;;  %v1890_v51 = vmul.f32 0.001953125, %v1888_v59  ;;  %v2048_v46 = vld [vmem:[#allocation10 + $0x398] sm:$0xff] }
 0x40a   : > { %v2054_v47 = vld [vmem:[#allocation10 + $0x3c8] sm:$0xff]  ;;  %v2056_v57 = vld [vmem:[#allocation10 + $0x3d8] sm:$0xff]  ;;  %v3441_v5 = vpack.c.bf16 %v2039_v53, %v2031_v58  ;;  %v2045_v8 = vld [vmem:[#allocation10 + $0x380] sm:$0xff] }
 0x40b   : > { %3402 = vmatpush1.bf16.msra.mxu0 %v3401_v32  ;;  %v1891_v2 = vmul.f32 %v1889_v62, %v1889_v62  ;;  %v3411_v6 = vpack.c.bf16 %v2054_v47, %v2046_v36  ;;  %v2053_v61 = vld [vmem:[#allocation10 + $0x3c0] sm:$0xff]  ;;  %v2047_v10 = vld [vmem:[#allocation10 + $0x390] sm:$0xff]  ;;  %v3443_v11 = vpack.c.bf16 %v2056_v57, %v2048_v46  ;;  %v1938_v17 = vld [vmem:[#allocation10 + $0x28] sm:$0xff]  ;;  %v1905_v26 = vrot.slane %v1889_v62, %v4117_v25 }
 0x40c   : > { %3434 = vmatpush1.bf16.msra.mxu1 %v3433_v39  ;;  %3404 = vmatprep.subr.bf16.mxu0 %v3403_v40  ;;  %v2055_v12 = vld [vmem:[#allocation10 + $0x3d0] sm:$0xff]  ;;  %v1946_v18 = vld [vmem:[#allocation10 + $0x68] sm:$0xff]  ;;  %v1940_v13 = vld [vmem:[#allocation10 + $0x38] sm:$0xff]  ;;  %v3413_v22 = vpack.c.bf16 %v2053_v61, %v2045_v8 }
 0x40d   : > { %3436 = vmatprep.subr.bf16.mxu1 %v3435_v44  ;;  %v1892_v16 = vsub.f32 %v1890_v51, %v1891_v2  ;;  %v1948_v21 = vld [vmem:[#allocation10 + $0x78] sm:$0xff]  ;;  %v3445_v15 = vpack.c.bf16 %v2055_v12, %v2047_v10  ;;  %v3447_v4 = vpack.c.bf16 %v1946_v18, %v1938_v17  ;;  %v1897_v3 = vld [vmem:[%s1896_s19] sm:$0xff]  ;;  %v1937_v29 = vld [vmem:[#allocation10 + $0x20] sm:$0xff] }
 0x40e   : > { %v3479_v23 = vpack.c.bf16 %v1948_v21, %v1940_v13  ;;  %v1898_v24 = vld [vmem:[%s1896_s19 + $0x8] sm:$0xff]  ;;  %v1899_v19 = vld [vmem:[%s1896_s19 + $0x10] sm:$0xff]  ;;  %v1907_v9 = vsub.f32 %v1897_v3, %v1905_v26  ;;  %v1900_v32 = vld [vmem:[%s1896_s19 + $0x18] sm:$0xff] }
 0x40f   : > { %3406 = vmatpush1.bf16.msra.mxu0 %v3405_v50  ;;  %v1893_v63 = vadd.f32 1e-05, %v1892_v16  ;;  %v1908_v14 = vsub.f32 %v1898_v24, %v1905_v26  ;;  %v1945_v30 = vld [vmem:[#allocation10 + $0x60] sm:$0xff]  ;;  %v1939_v34 = vld [vmem:[#allocation10 + $0x30] sm:$0xff]  ;;  %v1909_v37 = vsub.f32 %v1899_v19, %v1905_v26  ;;  %v1954_v41 = vld [vmem:[#allocation10 + $0xa8] sm:$0xff]  ;;  %v1910_v38 = vsub.f32 %v1900_v32, %v1905_v26 }
 0x410   : > { %3438 = vmatpush1.bf16.msra.mxu1 %v3437_v7  ;;  %3408 = vmatprep.subr.bf16.mxu0 %v3407_v56  ;;  %v1947_v35 = vld [vmem:[#allocation10 + $0x70] sm:$0xff]  ;;  %v1962_v42 = vld [vmem:[#allocation10 + $0xe8] sm:$0xff]  ;;  %v3449_v43 = vpack.c.bf16 %v1945_v30, %v1937_v29  ;;  %v1956_v31 = vld [vmem:[#allocation10 + $0xb8] sm:$0xff] }
 0x411   : > { %3440 = vmatprep.subr.bf16.mxu1 %v3439_v60  ;;  %3595 = vrsqrt.f32 %v1893_v63  ;;  %v3481_v44 = vpack.c.bf16 %v1947_v35, %v1939_v34  ;;  %v1964_v49 = vld [vmem:[#allocation10 + $0xf8] sm:$0xff]  ;;  %v1953_v48 = vld [vmem:[#allocation10 + $0xa0] sm:$0xff]  ;;  %v1955_v7 = vld [vmem:[#allocation10 + $0xb0] sm:$0xff]  ;;  %v3451_v52 = vpack.c.bf16 %v1962_v42, %v1954_v41 }
 0x412   : > { %v1961_v54 = vld [vmem:[#allocation10 + $0xe0] sm:$0xff]  ;;  %v1963_v56 = vld [vmem:[#allocation10 + $0xf0] sm:$0xff]  ;;  %v3483_v59 = vpack.c.bf16 %v1964_v49, %v1956_v31  ;;  %v1970_v60 = vld [vmem:[#allocation10 + $0x128] sm:$0xff] }
 0x413   : > { %3410 = vmatpush1.bf16.msra.mxu0 %v3409_v1  ;;  %v3453_v53 = vpack.c.bf16 %v1961_v54, %v1953_v48  ;;  %v1978_v36 = vld [vmem:[#allocation10 + $0x168] sm:$0xff]  ;;  %v1972_v47 = vld [vmem:[#allocation10 + $0x138] sm:$0xff]  ;;  %v3485_v46 = vpack.c.bf16 %v1963_v56, %v1955_v7  ;;  %v1969_v0 = vld [vmem:[#allocation10 + $0x120] sm:$0xff] }
 0x414   : > { %3442 = vmatpush1.bf16.msra.mxu1 %v3441_v5  ;;  %3412 = vmatprep.subr.bf16.mxu0 %v3411_v6  ;;  %v1980_v62 = vld [vmem:[#allocation10 + $0x178] sm:$0xff]  ;;  %v1977_v2 = vld [vmem:[#allocation10 + $0x160] sm:$0xff]  ;;  %v1971_v5 = vld [vmem:[#allocation10 + $0x130] sm:$0xff]  ;;  %v3455_v8 = vpack.c.bf16 %v1978_v36, %v1970_v60 }
 0x415   : > { %3444 = vmatprep.subr.bf16.mxu1 %v3443_v11  ;;  %v1979_v6 = vld [vmem:[#allocation10 + $0x170] sm:$0xff]  ;;  %v3487_v61 = vpack.c.bf16 %v1980_v62, %v1972_v47  ;;  %v1986_v10 = vld [vmem:[#allocation10 + $0x1a8] sm:$0xff]  ;;  %v1988_v12 = vld [vmem:[#allocation10 + $0x1b8] sm:$0xff]  ;;  %v3457_v18 = vpack.c.bf16 %v1977_v2, %v1969_v0 }
 0x416   : > { %v1994_v11 = vld [vmem:[#allocation10 + $0x1e8] sm:$0xff]  ;;  %v1996_v16 = vld [vmem:[#allocation10 + $0x1f8] sm:$0xff]  ;;  %v3489_v13 = vpack.c.bf16 %v1979_v6, %v1971_v5  ;;  %v1993_v63 = vld [vmem:[#allocation10 + $0x1e0] sm:$0xff] }
 0x417   : > { %3414 = vmatpush1.bf16.msra.mxu0 %v3413_v22  ;;  %v1985_v22 = vld [vmem:[#allocation10 + $0x1a0] sm:$0xff]  ;;  %v3459_v26 = vpack.c.bf16 %v1994_v11, %v1986_v10  ;;  %v3491_v3 = vpack.c.bf16 %v1996_v16, %v1988_v12  ;;  %v2010_v24 = vld [vmem:[#allocation10 + $0x268] sm:$0xff]  ;;  %v2004_v19 = vld [vmem:[#allocation10 + $0x238] sm:$0xff] }
 0x418   : > { %3446 = vmatpush1.bf16.msra.mxu1 %v3445_v15  ;;  %3448 = vmatprep.subr.bf16.mxu0 %v3447_v4  ;;  %v1987_v15 = vld [vmem:[#allocation10 + $0x1b0] sm:$0xff]  ;;  %v2001_v30 = vld [vmem:[#allocation10 + $0x220] sm:$0xff]  ;;  %v2020_v41 = vld [vmem:[#allocation10 + $0x2b8] sm:$0xff] }
 0x419   : > { %3480 = vmatprep.subr.bf16.mxu1 %v3479_v23  ;;  %v1995_v4 = vld [vmem:[#allocation10 + $0x1f0] sm:$0xff]  ;;  %v2002_v23 = vld [vmem:[#allocation10 + $0x228] sm:$0xff]  ;;  %v2028_v42 = vld [vmem:[#allocation10 + $0x2f8] sm:$0xff] }
 0x41a   : > { %v3493_v29 = vpack.c.bf16 %v1995_v4, %v1987_v15  ;;  %v3463_v34 = vpack.c.bf16 %v2010_v24, %v2002_v23  ;;  %v2011_v32 = vld [vmem:[#allocation10 + $0x270] sm:$0xff]  ;;  %v2017_v31 = vld [vmem:[#allocation10 + $0x2a0] sm:$0xff]  ;;  %v2034_v54 = vld [vmem:[#allocation10 + $0x328] sm:$0xff] }
 0x41b   : > { %v3596_v28 = vpop.eup %3595  ;;  %v2025_v49 = vld [vmem:[#allocation10 + $0x2e0] sm:$0xff]  ;;  %v2036_v7 = vld [vmem:[#allocation10 + $0x338] sm:$0xff]  ;;  %v2035_v62 = vld [vmem:[#allocation10 + $0x330] sm:$0xff] }
 0x41c   : > { %v1915_v33 = vrot.slane %v3596_v28, %v4117_v25  ;;  %v3461_v28 = vpack.c.bf16 %v1993_v63, %v1985_v22  ;;  %v2044_v56 = vld [vmem:[#allocation10 + $0x378] sm:$0xff]  ;;  %v2033_v60 = vld [vmem:[#allocation10 + $0x320] sm:$0xff]  ;;  %v2058_v0 = vld [vmem:[#allocation10 + $0x3e8] sm:$0xff] }
 0x41d   : > { %v3503_v47 = vpack.c.bf16 %v2044_v56, %v2036_v7  ;;  %v2060_v2 = vld [vmem:[#allocation10 + $0x3f8] sm:$0xff]  ;;  %v2057_v11 = vld [vmem:[#allocation10 + $0x3e0] sm:$0xff]  ;;  %v2051_v12 = vld [vmem:[#allocation10 + $0x3b0] sm:$0xff] }
 0x41e   : > { %v1917_v39 = vmul.f32 %v1915_v33, %v1907_v9  ;;  %v1918_v40 = vmul.f32 %v1915_v33, %v1908_v14  ;;  %v1919_v55 = vmul.f32 %v1915_v33, %v1909_v37  ;;  %v1920_v1 = vmul.f32 %v1915_v33, %v1910_v38  ;;  %v2012_v9 = vld [vmem:[#allocation10 + $0x278] sm:$0xff]  ;;  %v2009_v33 = vld [vmem:[#allocation10 + $0x260] sm:$0xff]  ;;  %v2003_v37 = vld [vmem:[#allocation10 + $0x230] sm:$0xff] }
 0x41f   : > { %v3495_v35 = vpack.c.bf16 %v2012_v9, %v2004_v19  ;;  %v3499_v38 = vpack.c.bf16 %v2028_v42, %v2020_v41  ;;  %v2059_v16 = vld [vmem:[#allocation10 + $0x3f0] sm:$0xff] }
 0x420   : > { %vm1921_vm15 = vcmp.gt.f32.partialorder %v1917_v39, 0.0  ;;  %v1925_v27 = vmul.f32 0.2, %v1917_v39  ;;  %v1926_v50 = vmul.f32 0.2, %v1918_v40  ;;  %vm1922_vm0 = vcmp.gt.f32.partialorder %v1918_v40, 0.0 }
 0x421   : > { %v1927_v57 = vmul.f32 0.2, %v1919_v55  ;;  %vm1923_vm1 = vcmp.gt.f32.partialorder %v1919_v55, 0.0  ;;  %v1928_v21 = vmul.f32 0.2, %v1920_v1  ;;  %vm1924_vm2 = vcmp.gt.f32.partialorder %v1920_v1, 0.0 }
 0x422   : > { %v4121_v58 = vsel %vm1921_vm15, %v1917_v39, %v1925_v27  ;;  %v4125_v51 = vsel %vm1922_vm0, %v1918_v40, %v1926_v50  ;;  %v2018_v39 = vld [vmem:[#allocation10 + $0x2a8] sm:$0xff]  ;;  %v2019_v27 = vld [vmem:[#allocation10 + $0x2b0] sm:$0xff] }
 0x423   : > { %2126 = vmatmul.mubr.f32.vlgmr.msra.gmra.mrb[0].mxu0 %v4121_v58  ;;  %2215 = vmatmul.mubr.f32.vlgmr.msra.gmra.mrb[0].mxu1 %v4121_v58  ;;  %v4132_v17 = vsel %vm1923_vm1, %v1919_v55, %v1927_v57  ;;  %v4138_v14 = vsel %vm1924_vm2, %v1920_v1, %v1928_v21  ;;  %v2026_v40 = vld [vmem:[#allocation10 + $0x2e8] sm:$0xff]  ;;  %v2027_v50 = vld [vmem:[#allocation10 + $0x2f0] sm:$0xff]  ;;  %v2052_v1 = vld [vmem:[#allocation10 + $0x3b8] sm:$0xff] }
 0x424   : > { %3450 = vmatpush1.bf16.msra.mxu0 %v3449_v43  ;;  %3482 = vmatpush1.bf16.msra.mxu1 %v3481_v44  ;;  %v3465_v43 = vpack.c.bf16 %v2009_v33, %v2001_v30  ;;  %v3497_v44 = vpack.c.bf16 %v2011_v32, %v2003_v37  ;;  %v3467_v48 = vpack.c.bf16 %v2026_v40, %v2018_v39  ;;  %v2042_v55 = vld [vmem:[#allocation10 + $0x368] sm:$0xff] }
 0x425   : > { %2131 = vmatprep.mubr.f32.mxu0 %v3711_v45  ;;  %2220 = vmatprep.mubr.f32.mxu1 %v3711_v45  ;;  %v3471_v36 = vpack.c.bf16 %v2042_v55, %v2034_v54  ;;  %v2050_v57 = vld [vmem:[#allocation10 + $0x3a8] sm:$0xff]  ;;  %v3507_v10 = vpack.c.bf16 %v2060_v2, %v2052_v1 }
 0x426   : > { %3452 = vmatprep.subr.bf16.mxu0 %v3451_v52  ;;  %3484 = vmatprep.subr.bf16.mxu1 %v3483_v59  ;;  %v3469_v52 = vpack.c.bf16 %v2025_v49, %v2017_v31  ;;  %v3501_v59 = vpack.c.bf16 %v2027_v50, %v2019_v27 }
 0x427   : > { %2132 = vmatmul.mubr.f32.gmra.mrb[2].mxu0 %v4125_v51  ;;  %2221 = vmatmul.mubr.f32.gmra.mrb[2].mxu1 %v4125_v51 }
 0x428   : > { %3454 = vmatpush1.bf16.msra.mxu0 %v3453_v53  ;;  %3486 = vmatpush1.bf16.msra.mxu1 %v3485_v46  ;;  %v2041_v53 = vld [vmem:[#allocation10 + $0x360] sm:$0xff]  ;;  %v2043_v46 = vld [vmem:[#allocation10 + $0x370] sm:$0xff] }
 0x429   : > { %2137 = vmatprep.mubr.f32.mxu0 %v3711_v45  ;;  %2226 = vmatprep.mubr.f32.mxu1 %v3711_v45  ;;  %v3473_v5 = vpack.c.bf16 %v2041_v53, %v2033_v60  ;;  %v3505_v6 = vpack.c.bf16 %v2043_v46, %v2035_v62 }
 0x42a   : > { %3456 = vmatprep.subr.bf16.mxu0 %v3455_v8  ;;  %3488 = vmatprep.subr.bf16.mxu1 %v3487_v61  ;;  %v2049_v8 = vld [vmem:[#allocation10 + $0x3a0] sm:$0xff]  ;;  %v3475_v61 = vpack.c.bf16 %v2058_v0, %v2050_v57 }
 0x42b   : > { %2138 = vmatmul.mubr.f32.gmra.mrb[4].mxu0 %v4132_v17  ;;  %2227 = vmatmul.mubr.f32.gmra.mrb[4].mxu1 %v4132_v17 }
 0x42c   : > { %3458 = vmatpush1.bf16.msra.mxu0 %v3457_v18  ;;  %3490 = vmatpush1.bf16.msra.mxu1 %v3489_v13  ;;  %v3477_v18 = vpack.c.bf16 %v2057_v11, %v2049_v8  ;;  %v3509_v13 = vpack.c.bf16 %v2059_v16, %v2051_v12 }
 0x42d   : > { %2143 = vmatprep.mubr.f32.mxu0 %v3711_v45  ;;  %2232 = vmatprep.mubr.f32.mxu1 %v3711_v45 }
 0x42e   : > { %3460 = vmatprep.subr.bf16.mxu0 %v3459_v26  ;;  %3492 = vmatprep.subr.bf16.mxu1 %v3491_v3 }
 0x42f   : > { %2144 = vmatmul.mubr.f32.gmra.mrb[6].mxu0 %v4138_v14  ;;  %2233 = vmatmul.mubr.f32.gmra.mrb[6].mxu1 %v4138_v14 }
 0x430   : > { %3462 = vmatpush1.bf16.msra.mxu0 %v3461_v28  ;;  %3494 = vmatpush1.bf16.msra.mxu1 %v3493_v29 }
 0x431   : > { %3464 = vmatprep.subr.bf16.mxu0 %v3463_v34  ;;  %3496 = vmatprep.subr.bf16.mxu1 %v3495_v35 }
 0x432   : > { %2303 = vmatprep.mubr.f32.mxu0 %v3711_v45  ;;  %2392 = vmatprep.mubr.f32.mxu1 %v3711_v45 }
 0x434   : > { %3466 = vmatpush1.bf16.msra.mxu0 %v3465_v43  ;;  %3498 = vmatpush1.bf16.msra.mxu1 %v3497_v44 }
 0x435   : > { %3468 = vmatprep.subr.bf16.mxu0 %v3467_v48  ;;  %3500 = vmatprep.subr.bf16.mxu1 %v3499_v38 }
 0x438   : > { %3470 = vmatpush1.bf16.msra.mxu0 %v3469_v52  ;;  %3502 = vmatpush1.bf16.msra.mxu1 %v3501_v59 }
 0x439   : > { %3472 = vmatprep.subr.bf16.mxu0 %v3471_v36  ;;  %3504 = vmatprep.subr.bf16.mxu1 %v3503_v47 }
 0x43c   : > { %3474 = vmatpush1.bf16.msra.mxu0 %v3473_v5  ;;  %3506 = vmatpush1.bf16.msra.mxu1 %v3505_v6 }
 0x43d   : > { %3476 = vmatprep.subr.bf16.mxu0 %v3475_v61  ;;  %3508 = vmatprep.subr.bf16.mxu1 %v3507_v10 }
 0x440   : > { %3478 = vmatpush1.bf16.msra.mxu0 %v3477_v18  ;;  %3510 = vmatpush1.bf16.msra.mxu1 %v3509_v13 }
 0x443   : > { %2304 = vmatmul.mubr.f32.vlgmr.msra.gmra.mrb[8].mxu0 %v4121_v58  ;;  %2393 = vmatmul.mubr.f32.vlgmr.msra.gmra.mrb[8].mxu1 %v4121_v58 }
 0x444   : > { %2309 = vmatprep.mubr.f32.mxu0 %v3711_v45  ;;  %2398 = vmatprep.mubr.f32.mxu1 %v3711_v45 }
 0x447   : > { %2310 = vmatmul.mubr.f32.gmra.mrb[10].mxu0 %v4125_v51  ;;  %2399 = vmatmul.mubr.f32.gmra.mrb[10].mxu1 %v4125_v51 }
 0x448   : > { %2315 = vmatprep.mubr.f32.mxu0 %v3711_v45  ;;  %2404 = vmatprep.mubr.f32.mxu1 %v3711_v45 }
 0x44b   : > { %2316 = vmatmul.mubr.f32.gmra.mrb[12].mxu0 %v4132_v17  ;;  %2405 = vmatmul.mubr.f32.gmra.mrb[12].mxu1 %v4132_v17 }
 0x44c   : > { %2321 = vmatprep.mubr.f32.mxu0 %v3711_v45  ;;  %2410 = vmatprep.mubr.f32.mxu1 %v3711_v45 }
 0x44f   : > { %2322 = vmatmul.mubr.f32.gmra.mrb[14].mxu0 %v4138_v14  ;;  %2411 = vmatmul.mubr.f32.gmra.mrb[14].mxu1 %v4138_v14 }
 0x4f6   : > { %v2127_v58 = vpop.f32.mrb[0].mxu0  ;;  %v2216_v21 = vpop.f32.mrb[0].mxu1 }
 0x4f7   : > { %v2129_v22 = vpop.f32.mrb[1].mxu0  ;;  %v2218_v51 = vpop.f32.mrb[1].mxu1  ;;  %v2551_v63 = vmul.f32 %v2127_v58, %v2127_v58  ;;  %v2553_v15 = vmul.f32 %v2216_v21, %v2216_v21 }
 0x4f8   : > { %v2552_v4 = vmul.f32 %v2129_v22, %v2129_v22  ;;  %v2554_v23 = vmul.f32 %v2218_v51, %v2218_v51 }
 0x4fa   : > { %v2133_v26 = vpop.f32.mrb[2].mxu0  ;;  %v2222_v3 = vpop.f32.mrb[2].mxu1 }
 0x4fb   : > { %v2418_v24 = vadd.f32 %v2133_v26, %v2127_v58  ;;  %v2559_v17 = vmul.f32 %v2133_v26, %v2133_v26  ;;  %v2716_v19 = vmax.f32 %v2127_v58, %v2133_v26  ;;  %v2436_v9 = vadd.f32 %v2222_v3, %v2216_v21  ;;  %v2135_v28 = vpop.f32.mrb[3].mxu0  ;;  %v2224_v45 = vpop.f32.mrb[3].mxu1 }
 0x4fc   : > { %v2561_v29 = vmul.f32 %v2222_v3, %v2222_v3  ;;  %v2734_v30 = vmax.f32 %v2216_v21, %v2222_v3  ;;  %v2427_v33 = vadd.f32 %v2135_v28, %v2129_v22  ;;  %v2560_v14 = vmul.f32 %v2135_v28, %v2135_v28 }
 0x4fd   : > { %v2583_v34 = vadd.f32 %v2559_v17, %v2551_v63  ;;  %v2725_v35 = vmax.f32 %v2129_v22, %v2135_v28  ;;  %v2445_v37 = vadd.f32 %v2224_v45, %v2218_v51  ;;  %v2562_v32 = vmul.f32 %v2224_v45, %v2224_v45 }
 0x4fe   : > { %v2601_v39 = vadd.f32 %v2561_v29, %v2553_v15  ;;  %v2592_v40 = vadd.f32 %v2560_v14, %v2552_v4  ;;  %v2743_v41 = vmax.f32 %v2218_v51, %v2224_v45  ;;  %v2139_v42 = vpop.f32.mrb[4].mxu0  ;;  %v2228_v43 = vpop.f32.mrb[4].mxu1 }
 0x4ff   : > { %v2610_v44 = vadd.f32 %v2562_v32, %v2554_v23  ;;  %v2419_v31 = vadd.f32 %v2418_v24, %v2139_v42  ;;  %v2567_v49 = vmul.f32 %v2139_v42, %v2139_v42  ;;  %v2717_v48 = vmax.f32 %v2716_v19, %v2139_v42  ;;  %v2141_v38 = vpop.f32.mrb[5].mxu0  ;;  %v2230_v27 = vpop.f32.mrb[5].mxu1 }
 0x500   : > { %v2437_v50 = vadd.f32 %v2436_v9, %v2228_v43  ;;  %v2569_v54 = vmul.f32 %v2228_v43, %v2228_v43  ;;  %v2735_v55 = vmax.f32 %v2734_v30, %v2228_v43  ;;  %v2428_v7 = vadd.f32 %v2427_v33, %v2141_v38 }
 0x501   : > { %v2584_v56 = vadd.f32 %v2583_v34, %v2567_v49  ;;  %v2568_v52 = vmul.f32 %v2141_v38, %v2141_v38  ;;  %v4160_v59 = vmax.f32 %v2725_v35, %v2141_v38  ;;  %v4162_v60 = vadd.f32 %v2445_v37, %v2230_v27 }
 0x502   : > { %v2602_v53 = vadd.f32 %v2601_v39, %v2569_v54  ;;  %v2570_v36 = vmul.f32 %v2230_v27, %v2230_v27  ;;  %v4164_v47 = vmax.f32 %v2743_v41, %v2230_v27  ;;  %v2145_v62 = vpop.f32.mrb[6].mxu0  ;;  %v2234_v46 = vpop.f32.mrb[6].mxu1  ;;  %v3712_v34 = vmov 1966171168  }
 0x503   : > { %v2593_v57 = vadd.f32 %v2592_v40, %v2568_v52  ;;  %v2420_v0 = vadd.f32 %v2419_v31, %v2145_v62  ;;  %v2575_v1 = vmul.f32 %v2145_v62, %v2145_v62  ;;  %v2718_v2 = vmax.f32 %v2717_v48, %v2145_v62  ;;  %v2147_v5 = vpop.f32.mrb[7].mxu0  ;;  %v2236_v6 = vpop.f32.mrb[7].mxu1 }
 0x504   : > { %v4166_v8 = vadd.f32 %v2610_v44, %v2570_v36  ;;  %v2438_v61 = vadd.f32 %v2437_v50, %v2234_v46  ;;  %v2577_v10 = vmul.f32 %v2234_v46, %v2234_v46  ;;  %v2736_v11 = vmax.f32 %v2735_v55, %v2234_v46 }
 0x505   : > { %v2421_v12 = vrot.slane %v2420_v0, 4  ;;  %v2585_v16 = vadd.f32 %v2584_v56, %v2575_v1  ;;  %v2719_v18 = vrot.slane %v2718_v2, 4  ;;  %v2429_v13 = vadd.f32 %v2428_v7, %v2147_v5 }
 0x506   : > { %v2439_v58 = vrot.slane %v2438_v61, 4  ;;  %v2603_v21 = vadd.f32 %v2602_v53, %v2577_v10  ;;  %v2737_v22 = vrot.slane %v2736_v11, 4  ;;  %v2576_v51 = vmul.f32 %v2147_v5, %v2147_v5 }
 0x507   : > { %v2422_v63 = vadd.f32 %v2421_v12, %v2420_v0  ;;  %v2586_v15 = vrot.slane %v2585_v16, 4  ;;  %v2720_v4 = vmax.f32 %v2718_v2, %v2719_v18  ;;  %v2430_v23 = vrot.slane %v2429_v13, 4 }
 0x508   : > { %v2440_v26 = vadd.f32 %v2439_v58, %v2438_v61  ;;  %v2604_v3 = vrot.slane %v2603_v21, 4  ;;  %v2738_v24 = vmax.f32 %v2736_v11, %v2737_v22  ;;  %v2594_v17 = vadd.f32 %v2593_v57, %v2576_v51 }
 0x509   : > { %v2423_v19 = vrot.slane %v2422_v63, 2  ;;  %v2587_v9 = vadd.f32 %v2586_v15, %v2585_v16  ;;  %v2721_v28 = vrot.slane %v2720_v4, 2  ;;  %v2431_v45 = vadd.f32 %v2430_v23, %v2429_v13 }
 0x50a   : > { %v2441_v29 = vrot.slane %v2440_v26, 2  ;;  %v2605_v30 = vadd.f32 %v2604_v3, %v2603_v21  ;;  %v2739_v33 = vrot.slane %v2738_v24, 2  ;;  %v2595_v14 = vrot.slane %v2594_v17, 4 }
 0x50b   : > { %v2503_v35 = vunpack.c.l.s4 %v3712_v34  ;;  %v2424_v37 = vadd.f32 %v2423_v19, %v2422_v63  ;;  %v2588_v32 = vrot.slane %v2587_v9, 2  ;;  %v2432_v39 = vrot.slane %v2431_v45, 2 }
 0x50c   : > { %v2722_v40 = vmax.f32 %v2720_v4, %v2721_v28  ;;  %v2442_v41 = vadd.f32 %v2441_v29, %v2440_v26  ;;  %v2606_v42 = vrot.slane %v2605_v30, 2  ;;  %v2596_v43 = vadd.f32 %v2595_v14, %v2594_v17 }
 0x50d   : > { %v2425_v44 = vrot.slane %v2424_v37, 1  ;;  %v2589_v31 = vadd.f32 %v2588_v32, %v2587_v9  ;;  %v2740_v49 = vmax.f32 %v2738_v24, %v2739_v33  ;;  %v2433_v48 = vadd.f32 %v2432_v39, %v2431_v45 }
 0x50e   : > { %v2597_v38 = vrot.slane %v2596_v43, 2  ;;  %v2607_v54 = vadd.f32 %v2606_v42, %v2605_v30  ;;  %v2504_v7 = vunpack.c.0.s8 %v2503_v35  ;;  %v2723_v56 = vrot.slane %v2722_v40, 1 }
 0x50f   : > { %v2426_v27 = vadd.f32 %v2425_v44, %v2424_v37  ;;  %v2590_v50 = vrot.slane %v2589_v31, 1  ;;  %v2434_v55 = vrot.slane %v2433_v48, 1  ;;  %v2443_v52 = vrot.slane %v2442_v41, 1 }
 0x510   : > { %v2598_v53 = vadd.f32 %v2597_v38, %v2596_v43  ;;  %v2741_v36 = vrot.slane %v2740_v49, 1  ;;  %v2727_v46 = vmax.f32 %v4160_v59, %v2147_v5  ;;  %v2447_v57 = vadd.f32 %v4162_v60, %v2236_v6 }
 0x511   : > { %v2435_v62 = vadd.f32 %v2434_v55, %v2433_v48  ;;  %v2591_v0 = vadd.f32 %v2590_v50, %v2589_v31  ;;  %v2578_v2 = vmul.f32 %v2236_v6, %v2236_v6  ;;  %v2745_v61 = vmax.f32 %v4164_v47, %v2236_v6 }
 0x512   : > { %v2599_v1 = vrot.slane %v2598_v53, 1  ;;  %v2608_v10 = vrot.slane %v2607_v54, 1  ;;  %v2728_v12 = vrot.slane %v2727_v46, 4  ;;  %v2448_v16 = vrot.slane %v2447_v57, 4 }
 0x513   : > { %v2498_v11 = vcombine.low %v2426_v27, %v2435_v62  ;;  %v4172_v18 = vsub.s32 %v2504_v7, %v4113_v20  ;;  %v2612_v58 = vadd.f32 %v4166_v8, %v2578_v2  ;;  %v2746_v21 = vrot.slane %v2745_v61, 4 }
 0x514   : > { %v2600_v13 = vadd.f32 %v2599_v1, %v2598_v53  ;;  %v2724_v22 = vmax.f32 %v2722_v40, %v2723_v56  ;;  %v2729_v59 = vmax.f32 %v2727_v46, %v2728_v12  ;;  %v2449_v5 = vadd.f32 %v2448_v16, %v2447_v57 }
 0x515   : > { %v2444_v60 = vadd.f32 %v2443_v52, %v2442_v41  ;;  %v2613_v63 = vrot.slane %v2612_v58, 4  ;;  %v2747_v15 = vmax.f32 %v2745_v61, %v2746_v21  ;;  %v4179_v6 = vadd.f32 %v2608_v10, %v2607_v54 }
 0x516   : > { %v2663_v51 = vcombine.low %v2591_v0, %v2600_v13  ;;  %v4175_v4 = vpop.f32.mrb[8].mxu0  ;;  %v4177_v47 = vpop.f32.mrb[8].mxu1  ;;  %v2742_v23 = vmax.f32 %v2740_v49, %v2741_v36  ;;  %v2730_v26 = vrot.slane %v2729_v59, 2  ;;  %v2450_v3 = vrot.slane %v2449_v5, 2 }
 0x517   : > { %v4181_v24 = vpop.f32.mrb[9].mxu0  ;;  %v4183_v8 = vpop.f32.mrb[9].mxu1  ;;  %v4186_v17 = vrot.slane %v2498_v11, %v4172_v18  ;;  %v2614_v19 = vadd.f32 %v2613_v63, %v2612_v58  ;;  %v2748_v9 = vrot.slane %v2747_v15, 2  ;;  %v2555_v28 = vmul.f32 %v4175_v4, %v4175_v4 }
 0x518   : > { %v4191_v45 = vrot.slane %v2663_v51, %v4172_v18  ;;  %v2731_v29 = vmax.f32 %v2729_v59, %v2730_v26  ;;  %v2451_v30 = vadd.f32 %v2450_v3, %v2449_v5  ;;  %v2557_v33 = vmul.f32 %v4177_v47, %v4177_v47 }
 0x519   : > { %v2615_v14 = vrot.slane %v2614_v19, 2  ;;  %v2749_v34 = vmax.f32 %v2747_v15, %v2748_v9  ;;  %v2556_v35 = vmul.f32 %v4181_v24, %v4181_v24  ;;  %v2558_v37 = vmul.f32 %v4183_v8, %v4183_v8 }
 0x51a   : > { %v2311_v32 = vpop.f32.mrb[10].mxu0  ;;  %v2400_v39 = vpop.f32.mrb[10].mxu1  ;;  %v2732_v40 = vrot.slane %v2731_v29, 1  ;;  %v2452_v41 = vrot.slane %v2451_v30, 1 }
 0x51b   : > { %v2454_v42 = vadd.f32 %v2311_v32, %v4175_v4  ;;  %v2563_v43 = vmul.f32 %v2311_v32, %v2311_v32  ;;  %v2313_v44 = vpop.f32.mrb[11].mxu0  ;;  %v2402_v31 = vpop.f32.mrb[11].mxu1  ;;  %v2616_v49 = vadd.f32 %v2615_v14, %v2614_v19  ;;  %v2750_v48 = vrot.slane %v2749_v34, 1 }
 0x51c   : > { %v2752_v38 = vmax.f32 %v4175_v4, %v2311_v32  ;;  %v2472_v27 = vadd.f32 %v2400_v39, %v4177_v47  ;;  %v2733_v50 = vmax.f32 %v2731_v29, %v2732_v40  ;;  %v2453_v54 = vadd.f32 %v2452_v41, %v2451_v30 }
 0x51d   : > { %v2619_v55 = vadd.f32 %v2563_v43, %v2555_v28  ;;  %v2565_v7 = vmul.f32 %v2400_v39, %v2400_v39  ;;  %v2617_v56 = vrot.slane %v2616_v49, 1  ;;  %v2751_v52 = vmax.f32 %v2749_v34, %v2750_v48 }
 0x51e   : > { %v2770_v53 = vmax.f32 %v4177_v47, %v2400_v39  ;;  %v2463_v36 = vadd.f32 %v2313_v44, %v4181_v24  ;;  %v2317_v62 = vpop.f32.mrb[12].mxu0  ;;  %v2406_v46 = vpop.f32.mrb[12].mxu1  ;;  %v2796_v57 = vcombine.low %v2724_v22, %v2733_v50  ;;  %v2499_v0 = vcombine.low %v2444_v60, %v2453_v54 }
 0x51f   : > { %v2637_v1 = vadd.f32 %v2565_v7, %v2557_v33  ;;  %v2564_v2 = vmul.f32 %v2313_v44, %v2313_v44  ;;  %v2319_v61 = vpop.f32.mrb[13].mxu0  ;;  %v2408_v10 = vpop.f32.mrb[13].mxu1  ;;  %v2618_v11 = vadd.f32 %v2617_v56, %v2616_v49  ;;  %v2797_v12 = vcombine.low %v2742_v23, %v2751_v52 }
 0x520   : > { %v2761_v16 = vmax.f32 %v4181_v24, %v2313_v44  ;;  %v2481_v13 = vadd.f32 %v2402_v31, %v4183_v8  ;;  %v4207_v58 = vrot.slane %v2796_v57, %v4172_v18  ;;  %v4210_v21 = vrot.slane %v2499_v0, %v4172_v18 }
 0x521   : > { %v2628_v59 = vadd.f32 %v2564_v2, %v2556_v35  ;;  %v2566_v5 = vmul.f32 %v2402_v31, %v2402_v31  ;;  %v2664_v22 = vcombine.low %v4179_v6, %v2618_v11  ;;  %v4214_v60 = vrot.slane %v2797_v12, %v4172_v18 }
 0x522   : > { %v2779_v51 = vmax.f32 %v4183_v8, %v2402_v31  ;;  %v2455_v63 = vadd.f32 %v2454_v42, %v2317_v62  ;;  %v2323_v15 = vpop.f32.mrb[14].mxu0  ;;  %v2412_v4 = vpop.f32.mrb[14].mxu1  ;;  %v2530_v47 = vcombine.low %v4186_v17, %v4210_v21  ;;  %v2571_v26 = vmul.f32 %v2317_v62, %v2317_v62 }
 0x523   : > { %v2646_v23 = vadd.f32 %v2566_v5, %v2558_v37  ;;  %v2753_v3 = vmax.f32 %v2752_v38, %v2317_v62  ;;  %v2325_v24 = vpop.f32.mrb[15].mxu0  ;;  %v4219_v19 = vpop.f32.mrb[15].mxu1  ;;  %v4222_v9 = vrot.slane %v2664_v22, %v4172_v18  ;;  %v2828_v6 = vcombine.low %v4207_v58, %v4214_v60  ;;  %v2550_v60 = vld [vmem:[%s4339_s6] sm:$0xff] }
 0x524   : > { %v2473_v28 = vadd.f32 %v2472_v27, %v2406_v46  ;;  %v2573_v8 = vmul.f32 %v2406_v46, %v2406_v46  ;;  %v2620_v29 = vadd.f32 %v2619_v55, %v2571_v26  ;;  %v2771_v30 = vmax.f32 %v2770_v53, %v2406_v46 }
 0x525   : > { %v2464_v33 = vadd.f32 %v2463_v36, %v2319_v61  ;;  %v2695_v14 = vcombine.low %v4191_v45, %v4222_v9  ;;  %v2572_v35 = vmul.f32 %v2319_v61, %v2319_v61  ;;  %v2762_v37 = vmax.f32 %v2761_v16, %v2319_v61 }
 0x526   : > { %v2638_v34 = vadd.f32 %v2637_v1, %v2573_v8  ;;  %v2482_v32 = vadd.f32 %v2481_v13, %v2408_v10  ;;  %v2574_v39 = vmul.f32 %v2408_v10, %v2408_v10  ;;  %v2780_v40 = vmax.f32 %v2779_v51, %v2408_v10 }
 0x527   : > { %v2629_v41 = vadd.f32 %v2628_v59, %v2572_v35  ;;  %v2456_v42 = vadd.f32 %v2455_v63, %v2323_v15  ;;  %v2579_v43 = vmul.f32 %v2323_v15, %v2323_v15  ;;  %v2754_v31 = vmax.f32 %v2753_v3, %v2323_v15 }
 0x528   : > { %v2647_v44 = vadd.f32 %v2646_v23, %v2574_v39  ;;  %v2474_v49 = vadd.f32 %v2473_v28, %v2412_v4  ;;  %v2581_v48 = vmul.f32 %v2412_v4, %v2412_v4  ;;  %v2772_v50 = vmax.f32 %v2771_v30, %v2412_v4 }
 0x529   : > { %v2457_v38 = vrot.slane %v2456_v42, 4  ;;  %v2621_v27 = vadd.f32 %v2620_v29, %v2579_v43  ;;  %v2465_v54 = vadd.f32 %v2464_v33, %v2325_v24  ;;  %v2580_v7 = vmul.f32 %v2325_v24, %v2325_v24 }
 0x52a   : > { %v2639_v55 = vadd.f32 %v2638_v34, %v2581_v48  ;;  %v2755_v53 = vrot.slane %v2754_v31, 4  ;;  %v2475_v62 = vrot.slane %v2474_v49, 4  ;;  %v2773_v46 = vrot.slane %v2772_v50, 4 }
 0x52b   : > { %v2458_v56 = vadd.f32 %v2457_v38, %v2456_v42  ;;  %v2622_v52 = vrot.slane %v2621_v27, 4  ;;  %v2466_v36 = vrot.slane %v2465_v54, 4  ;;  %v2630_v57 = vadd.f32 %v2629_v41, %v2580_v7 }
 0x52c   : > { %v2640_v2 = vrot.slane %v2639_v55, 4  ;;  %v2756_v16 = vmax.f32 %v2754_v31, %v2755_v53  ;;  %v2476_v59 = vadd.f32 %v2475_v62, %v2474_v49  ;;  %v2774_v5 = vmax.f32 %v2772_v50, %v2773_v46 }
 0x52d   : > { %v2459_v0 = vrot.slane %v2458_v56, 2  ;;  %v2623_v1 = vadd.f32 %v2622_v52, %v2621_v27  ;;  %v2467_v61 = vadd.f32 %v2466_v36, %v2465_v54  ;;  %v2631_v10 = vrot.slane %v2630_v57, 4 }
 0x52e   : > { %v2641_v15 = vadd.f32 %v2640_v2, %v2639_v55  ;;  %v2757_v28 = vrot.slane %v2756_v16, 2  ;;  %v2477_v29 = vrot.slane %v2476_v59, 2  ;;  %v2775_v34 = vrot.slane %v2774_v5, 2 }
 0x52f   : > { %v2460_v11 = vadd.f32 %v2459_v0, %v2458_v56  ;;  %v2624_v12 = vrot.slane %v2623_v1, 2  ;;  %v2468_v13 = vrot.slane %v2467_v61, 2  ;;  %v2632_v22 = vadd.f32 %v2631_v10, %v2630_v57 }
 0x530   : > { %v2642_v33 = vrot.slane %v2641_v15, 2  ;;  %v2763_v39 = vmax.f32 %v2762_v37, %v2325_v24  ;;  %v2483_v43 = vadd.f32 %v2482_v32, %v4219_v19  ;;  %v2582_v31 = vmul.f32 %v4219_v19, %v4219_v19 }
 0x531   : > { %v2461_v51 = vrot.slane %v2460_v11, 1  ;;  %v2625_v63 = vadd.f32 %v2624_v12, %v2623_v1  ;;  %v2469_v4 = vadd.f32 %v2468_v13, %v2467_v61  ;;  %v2633_v23 = vrot.slane %v2632_v22, 2 }
 0x532   : > { %v2758_v49 = vmax.f32 %v2756_v16, %v2757_v28  ;;  %v2764_v38 = vrot.slane %v2763_v39, 4  ;;  %v2781_v27 = vmax.f32 %v2780_v40, %v4219_v19  ;;  %v2478_v50 = vadd.f32 %v2477_v29, %v2476_v59  ;;  %v2856_v29 = vld [vmem:[%s4337_s4] sm:$0xff] }
 0x533   : > { %v2462_v26 = vadd.f32 %v2461_v51, %v2460_v11  ;;  %v2626_v3 = vrot.slane %v2625_v63, 1  ;;  %v2470_v8 = vrot.slane %v2469_v4, 1  ;;  %v2634_v30 = vadd.f32 %v2633_v23, %v2632_v22 }
 0x534   : > { %v2484_v55 = vrot.slane %v2483_v43, 4  ;;  %v2648_v7 = vadd.f32 %v2647_v44, %v2582_v31  ;;  %v2776_v56 = vmax.f32 %v2774_v5, %v2775_v34  ;;  %v2765_v52 = vmax.f32 %v2763_v39, %v2764_v38  ;;  %v2857_v34 = vld [vmem:[%s4337_s4 + $0x8] sm:$0xff] }
 0x535   : > { %v2471_v35 = vadd.f32 %v2470_v8, %v2469_v4  ;;  %v2627_v41 = vadd.f32 %v2626_v3, %v2625_v63  ;;  %v2635_v42 = vrot.slane %v2634_v30, 1  ;;  %v2782_v53 = vrot.slane %v2781_v27, 4 }
 0x536   : > { %v2643_v24 = vadd.f32 %v2642_v33, %v2641_v15  ;;  %v2485_v36 = vadd.f32 %v2484_v55, %v2483_v43  ;;  %v2649_v62 = vrot.slane %v2648_v7, 4  ;;  %v2759_v32 = vrot.slane %v2758_v49, 1 }
 0x537   : > { %v2500_v48 = vcombine.low %v2462_v26, %v2471_v35  ;;  %v2636_v54 = vadd.f32 %v2635_v42, %v2634_v30  ;;  %v2766_v46 = vrot.slane %v2765_v52, 2  ;;  %v2783_v57 = vmax.f32 %v2781_v27, %v2782_v53 }
 0x538   : > { %v2479_v0 = vrot.slane %v2478_v50, 1  ;;  %v2486_v1 = vrot.slane %v2485_v36, 2  ;;  %v2650_v2 = vadd.f32 %v2649_v62, %v2648_v7  ;;  %v2777_v61 = vrot.slane %v2776_v56, 1 }
 0x539   : > { %v2665_v37 = vcombine.low %v2627_v41, %v2636_v54  ;;  %v2767_v10 = vmax.f32 %v2765_v52, %v2766_v46  ;;  %v2784_v19 = vrot.slane %v2783_v57, 2  ;;  %v3713_v40 = vmov 1983009808  }
 0x53a   : > { %v2903_v11 = vunpack.c.l.s4 %v3713_v40  ;;  %v2644_v12 = vrot.slane %v2643_v24, 1  ;;  %v2487_v44 = vadd.f32 %v2486_v1, %v2485_v36  ;;  %v2651_v16 = vrot.slane %v2650_v2, 2 }
 0x53b   : > { %v2760_v13 = vmax.f32 %v2758_v49, %v2759_v32  ;;  %v2768_v59 = vrot.slane %v2767_v10, 1  ;;  %v2785_v5 = vmax.f32 %v2783_v57, %v2784_v19  ;;  %v2480_v22 = vadd.f32 %v2479_v0, %v2478_v50 }
 0x53c   : > { %v2488_v51 = vrot.slane %v2487_v44, 1  ;;  %v2652_v63 = vadd.f32 %v2651_v16, %v2650_v2  ;;  %v2778_v15 = vmax.f32 %v2776_v56, %v2777_v61  ;;  %v2904_v26 = vunpack.c.0.s8 %v2903_v11 }
 0x53d   : > { %v2769_v4 = vmax.f32 %v2767_v10, %v2768_v59  ;;  %v2786_v23 = vrot.slane %v2785_v5, 1  ;;  %v2645_v3 = vadd.f32 %v2644_v12, %v2643_v24  ;;  %v2522_v35 = vrot.slane %v2500_v48, %v4172_v18  ;;  %v2417_v10 = vld [vmem:[%s4338_s5] sm:$0xff] }
 0x53e   : > { %v2489_v28 = vadd.f32 %v2488_v51, %v2487_v44  ;;  %v2653_v8 = vrot.slane %v2652_v63, 1  ;;  %v2901_v31 = vcombine.high %v2856_v29, %v2856_v29  ;;  %v4241_v49 = vsub.s32 %v2904_v26, %v4113_v20 }
 0x53f   : > { %v2798_v30 = vcombine.low %v2760_v13, %v2769_v4  ;;  %v2787_v33 = vmax.f32 %v2785_v5, %v2786_v23  ;;  %v2687_v38 = vrot.slane %v2665_v37, %v4172_v18  ;;  %v2918_v54 = vcombine.high %v2857_v34, %v2857_v34 }
 0x540   : > { %v2501_v39 = vcombine.low %v2480_v22, %v2489_v28  ;;  %v2654_v41 = vadd.f32 %v2653_v8, %v2652_v63  ;;  %v2865_v48 = vsub.s32 1, %v4113_v20  ;;  %v2869_v7 = vsub.s32 2, %v4113_v20 }
 0x541   : > { %v2820_v42 = vrot.slane %v2798_v30, %v4172_v18  ;;  %v2799_v43 = vcombine.low %v2778_v15, %v2787_v33  ;;  %v2873_v56 = vsub.s32 3, %v4113_v20  ;;  %v2853_v24 = vstv %s3683_s21 }
 0x542   : > { %v2529_v27 = vrot.slane %v2501_v39, %v4172_v18  ;;  %v2666_v50 = vcombine.low %v2645_v3, %v2654_v41  ;;  %v2877_v36 = vsub.s32 4, %v4113_v20  ;;  %v2908_v37 = vrot.slane %v2856_v29, %v4241_v49 }
 0x543   : > { %v2827_v55 = vrot.slane %v2799_v43, %v4172_v18  ;;  %v2915_v32 = vrot.slane %v2901_v31, %v4241_v49  ;;  %v2925_v46 = vrot.slane %v2857_v34, %v4241_v49  ;;  %v2538_v57 = vrot.slane %v2530_v47, %v4172_v18 }
 0x544   : > { %v2531_v52 = vcombine.low %v2522_v35, %v2529_v27  ;;  %v2694_v53 = vrot.slane %v2666_v50, %v4172_v18  ;;  %v2932_v2 = vrot.slane %v2918_v54, %v4241_v49  ;;  %v2836_v61 = vrot.slane %v2828_v6, %v4172_v18 }
 0x545   : > { %v2829_v62 = vcombine.low %v2820_v42, %v2827_v55  ;;  %v2881_v40 = vsub.s32 5, %v4113_v20  ;;  %v2885_v17 = vsub.s32 6, %v4113_v20  ;;  %v2703_v21 = vrot.slane %v2695_v14, %v4172_v18 }
 0x546   : > { %v2545_v0 = vrot.slane %v2531_v52, %v4172_v18  ;;  %v2696_v1 = vcombine.low %v2687_v38, %v2694_v53  ;;  %v2889_v58 = vsub.s32 7, %v4113_v20  ;;  %vm4281_vm3 = vcmp.eq.s32.totalorder %v4113_v20, %v2853_v24 }
 0x547   : > { %v2843_v19 = vrot.slane %v2829_v62, %v4172_v18  ;;  %v2916_v44 = vcombine.high %v2908_v37, %v2908_v37  ;;  %v2917_v16 = vcombine.high %v2915_v32, %v2915_v32  ;;  %v2933_v9 = vcombine.high %v2925_v46, %v2925_v46 }
 0x548   : > { %v2546_v47 = vcombine.low %v2538_v57, %v2545_v0  ;;  %v2710_v11 = vrot.slane %v2696_v1, %v4172_v18  ;;  %v2934_v14 = vcombine.high %v2932_v2, %v2932_v2 }
 0x549   : > { %v2844_v6 = vcombine.low %v2836_v61, %v2843_v19 }
 0x54a   : > { %v2548_v13 = vadd.f32 %v2546_v47, %v2417_v10  ;;  %v2711_v45 = vcombine.low %v2703_v21, %v2710_v11 }
 0x54b   : > { %v2862_v18 = vrot.slane %v2844_v6, %v4117_v25  ;;  %v2866_v59 = vrot.slane %v2844_v6, %v2865_v48  ;;  %v2870_v5 = vrot.slane %v2844_v6, %v2869_v7  ;;  %v2874_v22 = vrot.slane %v2844_v6, %v2873_v56 }
 0x54c   : > { %2549 = vst [vmem:[%s4338_s5] sm:$0xff] %v2548_v13  ;;  %v2713_v51 = vadd.f32 %v2711_v45, %v2550_v60  ;;  %v2878_v20 = vrot.slane %v2844_v6, %v2877_v36  ;;  %v2882_v63 = vrot.slane %v2844_v6, %v2881_v40  ;;  %v2886_v15 = vrot.slane %v2844_v6, %v2885_v17 }
 0x54d   : > { %v2890_v4 = vrot.slane %v2844_v6, %v2889_v58  ;;  %v2943_v23 = vsel %vm4281_vm3, %v2862_v18, %v2908_v37  ;;  %v2944_v26 = vsel %vm4281_vm3, %v2866_v59, %v2916_v44  ;;  %v2945_v25 = vsel %vm4281_vm3, %v2870_v5, %v2915_v32 }
 0x54e   : > { %2714 = vst [vmem:[%s4339_s6] sm:$0xff] %v2713_v51  ;;  %v2946_v3 = vsel %vm4281_vm3, %v2874_v22, %v2917_v16  ;;  %v2947_v28 = vsel %vm4281_vm3, %v2878_v20, %v2925_v46  ;;  %v2948_v8 = vsel %vm4281_vm3, %v2882_v63, %v2933_v9  ;;  %v2949_v29 = vsel %vm4281_vm3, %v2886_v15, %v2932_v2 }
 0x54f   : > { %v2950_v30 = vsel %vm4281_vm3, %v2890_v4, %v2934_v14  ;;  %v2959_v33 = vcombine.low %v2943_v23, %v2944_v26  ;;  %v2960_v34 = vcombine.low %v2945_v25, %v2946_v3  ;;  %v2976_v35 = vcombine.low %v2947_v28, %v2948_v8 }
 0x550   : > { %v2977_v39 = vcombine.low %v2949_v29, %v2950_v30 }
 0x551   : > { %v2967_v41 = vrot.slane %v2959_v33, %v4241_v49  ;;  %v2974_v42 = vrot.slane %v2960_v34, %v4241_v49  ;;  %v2984_v43 = vrot.slane %v2976_v35, %v4241_v49 }
 0x552   : > { %v2991_v31 = vrot.slane %v2977_v39, %v4241_v49 }
 0x553   : > { %v2975_v38 = vcombine.low %v2967_v41, %v2974_v42 }
 0x554   : > { %v2992_v27 = vcombine.low %v2984_v43, %v2991_v31 }
 0x555   : > { %2995 = vst [vmem:[%s4337_s4] sm:$0xff] %v2975_v38 }
 0x556   : > { %2996 = vst [vmem:[%s4337_s4 + $0x8] sm:$0xff] %v2992_v27 }
 0x557 PF: > { %s19_s25 = sadd.s32 1, %s3699_s25   ;;  %s4350_s21 = smov %s3691_s23 }
 0x558   : > { %p16_p1 = scmp.ge.s32.totalorder %s19_s25, 8   ;;  %s4351_s22 = smov %s3695_s24 }
 0x559   : > { %s4352_s23 = smov %s4355_s27  ;;  %s4353_s24 = smov %s4359_s28 }
 0x55a   :  { %18 = sbr.rel (!%p16_p1) target bundleno = 4 (0x4), region = 117 }
 0x561   :  { %3020 = vsyncpa [#allocation9], 1 }
 0x562   :  { %3022 = vsyncpa [#allocation9 + $0x1], 1 }
 0x563   :  { %3023 = vsyncpa [#allocation11], 1 }

</bundles_post_ra>
